<compile_context>
chip_gen: v7x
topology: tpu7x:2x2x1
jax: 0.10.0
libtpu: 0.0.40
codegen_flags: <defaults>
</compile_context>

<pallas_src>
import functools

import jax
import jax.numpy as jnp
from jax import lax
from jax.experimental import pallas as pl
from jax.experimental.pallas import tpu as pltpu


def _base_conv_kernel(x_ref, w_ref, b_ref, o_ref, *, K, stride, tho, Wo,
                      use_bn, activation, mxu_dtype, eps=1e-5):
    # x_ref: (1, Hp, Wp, Cin)        padded NHWC image (resident across row tiles)
    # w_ref: (K*K*Cin, Cout_pad)     im2col weight matrix (mxu_dtype)
    # b_ref: (1, Cout_pad)           conv bias (f32)
    # o_ref: (1, tho, Wo, Cout_pad)  output row tile
    Cin = x_ref.shape[-1]
    Cout_pad = o_ref.shape[-1]

    t = pl.program_id(1)
    row0 = t * (tho * stride)                       # first padded input row of this tile
    in_rows = (tho - 1) * stride + 1
    in_cols = (Wo - 1) * stride + 1

    # Build the im2col patch matrix from K*K ref slices (taps ordered kh, kw, cin
    # to match the weight reshape in the wrapper).  No full-image load.
    taps = []
    for kh in range(K):
        for kw in range(K):
            if stride == 1:
                tap = x_ref[0, pl.ds(row0 + kh, tho), pl.ds(kw, Wo), :]
            else:
                win = x_ref[0, pl.ds(row0 + kh, in_rows), pl.ds(kw, in_cols), :]
                tap = lax.slice(win, (0, 0, 0), win.shape, (stride, stride, 1))
            taps.append(tap)                         # (tho, Wo, Cin)
    patches = jnp.concatenate(taps, axis=-1)         # (tho, Wo, K*K*Cin)
    patches = patches.reshape(tho * Wo, K * K * Cin).astype(mxu_dtype)

    # Single fused MXU matmul: contraction K*K*Cin, lane-dense N = Cout_pad.
    acc = jnp.dot(patches, w_ref[...], preferred_element_type=jnp.float32)
    acc = acc + b_ref[...]                           # (tho*Wo, Cout_pad), f32

    if use_bn:
        # nn.InstanceNorm2d defaults: affine=False, eps=1e-5, biased variance over
        # the spatial dims.  (tho == Ho is enforced in the wrapper for this path.)
        mean = jnp.mean(acc, axis=0, keepdims=True)
        var = jnp.mean(jnp.square(acc - mean), axis=0, keepdims=True)
        acc = (acc - mean) * lax.rsqrt(var + eps)

    if activation is not None:
        acc = activation(acc)

    o_ref[...] = acc.reshape(1, tho, Wo, Cout_pad).astype(o_ref.dtype)


def _largest_divisor_at_most(n, cap):
    cap = max(1, min(n, cap))
    for d in range(cap, 0, -1):
        if n % d == 0:
            return d
    return n


def base_conv(x_nchw, weight_oihw, bias, *, stride=1, use_bn=False,
              activation=None, mxu_dtype=jnp.bfloat16, row_tile=None):
    """Pallas implementation of BaseConv.forward (PyTorch NCHW / OIHW layout)."""
    N, Cin, H, W = x_nchw.shape
    Cout, _, K, _ = weight_oihw.shape
    pad = K // 2
    Ho = (H + 2 * pad - K) // stride + 1
    Wo = (W + 2 * pad - K) // stride + 1
    Hp, Wp = H + 2 * pad, W + 2 * pad
    out_dtype = x_nchw.dtype

    # Lane-dense output channels (padding stripped after the call).
    Cout_pad = ((Cout + 127) // 128) * 128
    KKC = K * K * Cin

    # Row tiling of the output.  InstanceNorm needs full-spatial statistics, so
    # that path processes one whole image per grid step.
    if use_bn:
        tho = Ho
    else:
        if row_tile is None:
            row_tile = max(1, (2 << 20) // (Wo * Cout_pad * 4))   # ~2 MiB f32 out tile
        tho = _largest_divisor_at_most(Ho, row_tile)
    n_tiles = Ho // tho

    # NCHW -> padded NHWC (single transpose + pad pass; kept in the input dtype).
    x = jnp.transpose(x_nchw, (0, 2, 3, 1))
    x_pad = jnp.pad(x, ((0, 0), (pad, pad), (pad, pad), (0, 0)))

    # Weight: (Cout, Cin, K, K) -> (K, K, Cin, Cout) -> (K*K*Cin, Cout_pad), MXU dtype.
    w = jnp.transpose(weight_oihw, (2, 3, 1, 0)).reshape(KKC, Cout)
    w = jnp.pad(w, ((0, 0), (0, Cout_pad - Cout))).astype(mxu_dtype)
    b = jnp.pad(bias.astype(jnp.float32), (0, Cout_pad - Cout)).reshape(1, Cout_pad)

    kernel = functools.partial(
        _base_conv_kernel, K=K, stride=stride, tho=tho, Wo=Wo,
        use_bn=use_bn, activation=activation, mxu_dtype=mxu_dtype)

    # VMEM budget: double-buffered input block + output block, weights, bias,
    # im2col patches + f32 accumulator.  Capped at 48 MiB (v7x has 64 MiB phys).
    x_esz = jnp.dtype(x_pad.dtype).itemsize
    w_esz = jnp.dtype(mxu_dtype).itemsize
    o_esz = jnp.dtype(out_dtype).itemsize
    est = (2 * Hp * Wp * Cin * x_esz
           + 2 * tho * Wo * Cout_pad * o_esz
           + KKC * Cout_pad * w_esz + Cout_pad * 4
           + tho * Wo * (KKC * w_esz + Cout_pad * 4))
    vmem_limit = int(min(48 * 2 ** 20, max(16 * 2 ** 20, 2 * est)))

    cost = pl.CostEstimate(
        flops=int(2 * N * Ho * Wo * KKC * Cout_pad),
        transcendentals=0,
        bytes_accessed=int(x_pad.size * x_esz + w.size * w_esz + b.size * 4
                           + N * Ho * Wo * Cout_pad * o_esz))

    out_pad = pl.pallas_call(
        kernel,
        out_shape=jax.ShapeDtypeStruct((N, Ho, Wo, Cout_pad), out_dtype),
        grid_spec=pltpu.PrefetchScalarGridSpec(
            num_scalar_prefetch=0,
            grid=(N, n_tiles),
            in_specs=[
                # Full padded image; block index is independent of the row-tile
                # axis, so it stays resident in VMEM while t varies.
                pl.BlockSpec((1, Hp, Wp, Cin), lambda n, t: (n, 0, 0, 0)),
                pl.BlockSpec((KKC, Cout_pad), lambda n, t: (0, 0)),
                pl.BlockSpec((1, Cout_pad), lambda n, t: (0, 0)),
            ],
            out_specs=pl.BlockSpec((1, tho, Wo, Cout_pad),
                                   lambda n, t: (n, t, 0, 0)),
        ),
        compiler_params=pltpu.CompilerParams(
            dimension_semantics=("parallel", "parallel"),
            vmem_limit_bytes=vmem_limit),
        cost_estimate=cost,
    )(x_pad, w, b)

    out = out_pad[..., :Cout]                       # strip lane padding
    return jnp.transpose(out, (0, 3, 1, 2))         # back to NCHW


def _ref_base_conv(x_nchw, weight_oihw, bias, *, stride=1, use_bn=False,
                   activation=None):
    """Plain-JAX reference matching the PyTorch module."""
    K = weight_oihw.shape[-1]
    pad = K // 2
    out = lax.conv_general_dilated(
        x_nchw, weight_oihw, (stride, stride),
        ((pad, pad), (pad, pad)),
        dimension_numbers=("NCHW", "OIHW", "NCHW"))
    out = out + bias[None, :, None, None]
    if use_bn:
        mean = out.mean(axis=(2, 3), keepdims=True)
        var = ((out - mean) ** 2).mean(axis=(2, 3), keepdims=True)
        out = (out - mean) / jnp.sqrt(var + 1e-5)
    if activation is not None:
        out = activation(out)
    return out


if __name__ == "__main__":
    # BaseConv(in_channels=4, out_channels=8, kernel=3)
    N, Cin, H, W = 2, 4, 16, 16
    Cout, K = 8, 3

    key = jax.random.PRNGKey(0)
    kx, kw = jax.random.split(key)
    x = jax.random.normal(kx, (N, Cin, H, W), jnp.float32)
    # conv.weight ~ N(0, 0.01), conv.bias = 0  (as in __init__)
    weight = jax.random.normal(kw, (Cout, Cin, K, K), jnp.float32) * 0.01
    bias = jnp.zeros((Cout,), jnp.float32)

    # 1) Default config (conv only), exact f32 MXU path.
    out = jax.block_until_ready(
        base_conv(x, weight, bias, stride=1, mxu_dtype=jnp.float32))
    ref = _ref_base_conv(x, weight, bias, stride=1)
    assert jnp.allclose(out, ref, atol=1e-4, rtol=1e-4)

    # 2) Row-tiled path (4 output-row tiles per image) + ReLU, f32 MXU.
    out = jax.block_until_ready(
        base_conv(x, weight, bias, stride=1, activation=jax.nn.relu,
                  mxu_dtype=jnp.float32, row_tile=4))
    ref = _ref_base_conv(x, weight, bias, stride=1, activation=jax.nn.relu)
    assert jnp.allclose(out, ref, atol=1e-4, rtol=1e-4)

    # 3) stride=2 path, f32 MXU.
    out = jax.block_until_ready(
        base_conv(x, weight, bias, stride=2, mxu_dtype=jnp.float32))
    ref = _ref_base_conv(x, weight, bias, stride=2)
    assert jnp.allclose(out, ref, atol=1e-4, rtol=1e-4)

    # 4) InstanceNorm + ReLU with the default bf16 MXU path (f32 accumulation).
    out = jax.block_until_ready(
        base_conv(x, weight, bias, stride=1, use_bn=True, activation=jax.nn.relu))
    ref = _ref_base_conv(x, weight, bias, stride=1, use_bn=True,
                         activation=jax.nn.relu)
    assert jnp.allclose(out, ref, atol=3e-2, rtol=3e-2)

    print("KERNEL_OK")
</pallas_src>

<mosaic_0001>
module attributes {stable_mosaic.version = 11 : i64} {
  func.func @_base_conv_kernel(%arg0: i32, %arg1: i32, %arg2: memref<1x18x18x4xf32, #tpu.memory_space<vmem>>, %arg3: memref<36x128xf32, #tpu.memory_space<vmem>>, %arg4: memref<1x128xf32, #tpu.memory_space<vmem>>, %arg5: memref<1x16x16x128xf32, #tpu.memory_space<vmem>>) attributes {dimension_semantics = [#tpu.dimension_semantics<parallel>, #tpu.dimension_semantics<parallel>], iteration_bounds = array<i64: 2, 1>, scalar_prefetch = 0 : i64, scratch_operands = 0 : i64, tpu.core_type = #tpu.core_type<tc>, window_params = [{transform_indices = @transform_0, window_bounds = array<i64: 1, 18, 18, 4>}, {pipeline_mode = #tpu.pipeline_mode<synchronous>, transform_indices = @transform_1, window_bounds = array<i64: 36, 128>}, {pipeline_mode = #tpu.pipeline_mode<synchronous>, transform_indices = @transform_2, window_bounds = array<i64: 1, 128>}, {transform_indices = @transform_3, window_bounds = array<i64: 1, 16, 16, 128>}]} {
    %c16_i32 = arith.constant 16 : i32
    %0 = arith.muli %arg1, %c16_i32 : i32
    %c0_i32 = arith.constant 0 : i32
    %1 = arith.addi %0, %c0_i32 : i32
    %c0 = arith.constant 0 : index
    %2 = arith.index_cast %1 : i32 to index
    %c0_0 = arith.constant 0 : index
    %c0_1 = arith.constant 0 : index
    %3 = vector.load %arg2[%c0, %2, %c0_0, %c0_1] : memref<1x18x18x4xf32, #tpu.memory_space<vmem>>, vector<1x16x16x4xf32>
    %4 = vector.shape_cast %3 : vector<1x16x16x4xf32> to vector<16x16x4xf32>
    %c0_i32_2 = arith.constant 0 : i32
    %5 = arith.addi %0, %c0_i32_2 : i32
    %c0_3 = arith.constant 0 : index
    %6 = arith.index_cast %5 : i32 to index
    %c1 = arith.constant 1 : index
    %c0_4 = arith.constant 0 : index
    %7 = vector.load %arg2[%c0_3, %6, %c1, %c0_4] : memref<1x18x18x4xf32, #tpu.memory_space<vmem>>, vector<1x16x16x4xf32>
    %8 = vector.shape_cast %7 : vector<1x16x16x4xf32> to vector<16x16x4xf32>
    %c0_i32_5 = arith.constant 0 : i32
    %9 = arith.addi %0, %c0_i32_5 : i32
    %c0_6 = arith.constant 0 : index
    %10 = arith.index_cast %9 : i32 to index
    %c2 = arith.constant 2 : index
    %c0_7 = arith.constant 0 : index
    %11 = vector.load %arg2[%c0_6, %10, %c2, %c0_7] : memref<1x18x18x4xf32, #tpu.memory_space<vmem>>, vector<1x16x16x4xf32>
    %12 = vector.shape_cast %11 : vector<1x16x16x4xf32> to vector<16x16x4xf32>
    %c1_i32 = arith.constant 1 : i32
    %13 = arith.addi %0, %c1_i32 : i32
    %c0_8 = arith.constant 0 : index
    %14 = arith.index_cast %13 : i32 to index
    %c0_9 = arith.constant 0 : index
    %c0_10 = arith.constant 0 : index
    %15 = vector.load %arg2[%c0_8, %14, %c0_9, %c0_10] : memref<1x18x18x4xf32, #tpu.memory_space<vmem>>, vector<1x16x16x4xf32>
    %16 = vector.shape_cast %15 : vector<1x16x16x4xf32> to vector<16x16x4xf32>
    %c1_i32_11 = arith.constant 1 : i32
    %17 = arith.addi %0, %c1_i32_11 : i32
    %c0_12 = arith.constant 0 : index
    %18 = arith.index_cast %17 : i32 to index
    %c1_13 = arith.constant 1 : index
    %c0_14 = arith.constant 0 : index
    %19 = vector.load %arg2[%c0_12, %18, %c1_13, %c0_14] : memref<1x18x18x4xf32, #tpu.memory_space<vmem>>, vector<1x16x16x4xf32>
    %20 = vector.shape_cast %19 : vector<1x16x16x4xf32> to vector<16x16x4xf32>
    %c1_i32_15 = arith.constant 1 : i32
    %21 = arith.addi %0, %c1_i32_15 : i32
    %c0_16 = arith.constant 0 : index
    %22 = arith.index_cast %21 : i32 to index
    %c2_17 = arith.constant 2 : index
    %c0_18 = arith.constant 0 : index
    %23 = vector.load %arg2[%c0_16, %22, %c2_17, %c0_18] : memref<1x18x18x4xf32, #tpu.memory_space<vmem>>, vector<1x16x16x4xf32>
    %24 = vector.shape_cast %23 : vector<1x16x16x4xf32> to vector<16x16x4xf32>
    %c2_i32 = arith.constant 2 : i32
    %25 = arith.addi %0, %c2_i32 : i32
    %c0_19 = arith.constant 0 : index
    %26 = arith.index_cast %25 : i32 to index
    %c0_20 = arith.constant 0 : index
    %c0_21 = arith.constant 0 : index
    %27 = vector.load %arg2[%c0_19, %26, %c0_20, %c0_21] : memref<1x18x18x4xf32, #tpu.memory_space<vmem>>, vector<1x16x16x4xf32>
    %28 = vector.shape_cast %27 : vector<1x16x16x4xf32> to vector<16x16x4xf32>
    %c2_i32_22 = arith.constant 2 : i32
    %29 = arith.addi %0, %c2_i32_22 : i32
    %c0_23 = arith.constant 0 : index
    %30 = arith.index_cast %29 : i32 to index
    %c1_24 = arith.constant 1 : index
    %c0_25 = arith.constant 0 : index
    %31 = vector.load %arg2[%c0_23, %30, %c1_24, %c0_25] : memref<1x18x18x4xf32, #tpu.memory_space<vmem>>, vector<1x16x16x4xf32>
    %32 = vector.shape_cast %31 : vector<1x16x16x4xf32> to vector<16x16x4xf32>
    %c2_i32_26 = arith.constant 2 : i32
    %33 = arith.addi %0, %c2_i32_26 : i32
    %c0_27 = arith.constant 0 : index
    %34 = arith.index_cast %33 : i32 to index
    %c2_28 = arith.constant 2 : index
    %c0_29 = arith.constant 0 : index
    %35 = vector.load %arg2[%c0_27, %34, %c2_28, %c0_29] : memref<1x18x18x4xf32, #tpu.memory_space<vmem>>, vector<1x16x16x4xf32>
    %36 = vector.shape_cast %35 : vector<1x16x16x4xf32> to vector<16x16x4xf32>
    %37 = tpu.concatenate %4, %8, %12, %16, %20, %24, %28, %32, %36 in 2 : vector<16x16x4xf32>, vector<16x16x4xf32>, vector<16x16x4xf32>, vector<16x16x4xf32>, vector<16x16x4xf32>, vector<16x16x4xf32>, vector<16x16x4xf32>, vector<16x16x4xf32>, vector<16x16x4xf32> -> vector<16x16x36xf32>
    %38 = vector.shape_cast %37 : vector<16x16x36xf32> to vector<256x36xf32>
    %c0_30 = arith.constant 0 : index
    %c0_31 = arith.constant 0 : index
    %39 = vector.load %arg3[%c0_30, %c0_31] : memref<36x128xf32, #tpu.memory_space<vmem>>, vector<36x128xf32>
    %cst = arith.constant dense<0.000000e+00> : vector<256x128xf32>
    %40 = tpu.matmul %38, %39, %cst {dimension_numbers = #tpu.dot_dimension_numbers<[1], [0], [0], [1], [0, 0, 1, 1], [], []>} : vector<256x36xf32>, vector<36x128xf32>, vector<256x128xf32> -> vector<256x128xf32>
    %c0_32 = arith.constant 0 : index
    %c0_33 = arith.constant 0 : index
    %41 = vector.load %arg4[%c0_32, %c0_33] : memref<1x128xf32, #tpu.memory_space<vmem>>, vector<1x128xf32>
    %42 = vector.broadcast %41 : vector<1x128xf32> to vector<256x128xf32>
    %43 = arith.addf %40, %42 : vector<256x128xf32>
    %44 = vector.shape_cast %43 : vector<256x128xf32> to vector<1x16x16x128xf32>
    %c0_34 = arith.constant 0 : index
    %c0_35 = arith.constant 0 : index
    %c0_36 = arith.constant 0 : index
    %c0_37 = arith.constant 0 : index
    %45 = vector.load %arg5[%c0_34, %c0_35, %c0_36, %c0_37] : memref<1x16x16x128xf32, #tpu.memory_space<vmem>>, vector<1x16x16x128xf32>
    tpu.vector_store %arg5[%c0_34, %c0_35, %c0_36, %c0_37], %44 {strides = array<i32>} : memref<1x16x16x128xf32, #tpu.memory_space<vmem>>, vector<1x16x16x128xf32>,
    return
  }
  func.func @transform_0(%arg0: i32, %arg1: i32) -> (i32, i32, i32, i32) {
    %c0_i32 = arith.constant 0 : i32
    %c0_i32_0 = arith.constant 0 : i32
    %c0_i32_1 = arith.constant 0 : i32
    %c0_i32_2 = arith.constant 0 : i32
    return %arg0, %c0_i32, %c0_i32_0, %c0_i32_1 : i32, i32, i32, i32
  }
  func.func @transform_1(%arg0: i32, %arg1: i32) -> (i32, i32) {
    %c0_i32 = arith.constant 0 : i32
    %c0_i32_0 = arith.constant 0 : i32
    %c0_i32_1 = arith.constant 0 : i32
    return %c0_i32, %c0_i32_0 : i32, i32
  }
  func.func @transform_2(%arg0: i32, %arg1: i32) -> (i32, i32) {
    %c0_i32 = arith.constant 0 : i32
    %c0_i32_0 = arith.constant 0 : i32
    %c0_i32_1 = arith.constant 0 : i32
    return %c0_i32, %c0_i32_0 : i32, i32
  }
  func.func @transform_3(%arg0: i32, %arg1: i32) -> (i32, i32, i32, i32) {
    %c0_i32 = arith.constant 0 : i32
    %c0_i32_0 = arith.constant 0 : i32
    %c0_i32_1 = arith.constant 0 : i32
    return %arg0, %arg1, %c0_i32, %c0_i32_0 : i32, i32, i32, i32
  }
}

</mosaic_0001>

<bundles_post_ra>
// kernel: tpu_custom_call.1
= control target key start
LH: loop header
LB: loop body
LE: loop exit
PB: predicated region body
PF: predicated region fallthrough
CT: control target
= control target key end

     0   :  { %8 = vsyncpa [#allocation3], 0  ;;  %s4324_s0 = inlined_call_operand.vmem [shape: f32[2,18,18,4], index: 0, kind: input, shape index: {}]   ;;  %s4325_s1 = inlined_call_operand.vmem [shape: f32[36,128], index: 1, kind: input, shape index: {}]   ;;  %s4326_s2 = inlined_call_operand.vmem [shape: f32[1,128], index: 2, kind: input, shape index: {}]   ;;  %s4327_s3 = inlined_call_operand.hbm [shape: f32[2,16,16,128], index: 3, kind: output, shape index: {}]  }
   0x1   :  { %10 = vsyncpa [#allocation3 + $0x1], 0  ;;  %s2762_s12 = smov 0   ;;  %s2764_s13 = smov 0  }
   0x2   :  { %s2766_s14 = smov 0   ;;  %s2768_s15 = smov 0  }
   0x3   :  { %s2770_s16 = smov 0   ;;  %s2772_s17 = smov 0  }
   0x4 LB: > { %s2239_s18 = sadd.s32 4294967295, %s2730_s17   ;;  %s2240_s19 = sadd.s32 4294967294, %s2730_s17   ;;  %s2730_s17 = sphi %s2772_s17, %s16_s17   ;;  %s2726_s16 = sphi %s2770_s16, %s4468_s16   ;;  %s2722_s15 = sphi %s2768_s15, %s4467_s15   ;;  %s2718_s14 = sphi %s2766_s14, %s4466_s14   ;;  %s2714_s13 = sphi %s2764_s13, %s4465_s13   ;;  %s2710_s12 = sphi %s2762_s12, %s4464_s12  }
   0x5   : > { %s28_s20 = sadd.s32 1, %s2726_s16  ;;  %s105_s21 = sadd.s32 1, %s2718_s14 }
   0x6   : > { %p30_p0 = scmp.ge.s32.totalorder %s28_s20, 2  ;;  %p115_p1 = scmp.ne.s32.totalorder %s2718_s14, %s2714_s13 }
   0x7   : > { %p116_p2 = scmp.eq.s32.totalorder %s2239_s18, 1  ;;  %p121_p3 = scmp.ne.s32.totalorder %s2714_s13, %s2710_s12 }
   0x8   : > { %s4470_s20 = smov (%p30_p0, %s28_s20), 0  ;;  %p122_p5 = scmp.eq.s32.totalorder %s2240_s19, 1 }
   0x9   : > { %p2802_p4 = por %p116_p2, %p115_p1  ;;  %s100_s23 = ssub.s32 %s2726_s16, %s4470_s20 }
   0xa   : > { %p2243_p6 = scmp.ge.s32.totalorder %s2730_s17, 1  ;;  %p103_p7 = scmp.eq.s32.totalorder %s100_s23, 0 }
   0xb   : > { %p2809_p8 = por %p122_p5, %p121_p3  ;;  %p154_p9 = scmp.lt.s32.totalorder %s2730_s17, 3 }
   0xc   : > { %s2815_s25 = scalar_select %p103_p7, %s2718_s14, %s105_s21  }
   0xd   : > { %p155_p10 = pnand %p2243_p6, %p154_p9 }
   0xf   : > { %158 = sbr.rel (%p155_p10) target bundleno = 884 (0x374), region = 32 }
  0x16   : > { %p178_p11 = scmp.lt.s32.totalorder %s2722_s15, 1  ;;  %s2732_s4 = smov 4   ;;  %vm1505_vm0 = vcmask 31744   ;;  %vm1538_vm1 = vcmask 64512   ;;  %vm1878_vm2 = vcmask 1043456   ;;  %vm1571_vm3 = vcmask 97280  }
  0x17   : > { %s2733_s5 = smov 8   ;;  %s2734_s6 = smov 12   ;;  %vm1604_vm4 = vcmask 130048   ;;  %vm1637_vm5 = vcmask 162816   ;;  %vm1670_vm6 = vcmask 195584   ;;  %vm1703_vm7 = vcmask 228352  }
  0x18   : > { %s179_s26 = scalar_select %p178_p11, %s2722_s15, 1  ;;  %vm1736_vm8 = vcmask 261120   ;;  %vm1781_vm9 = vcmask 293888  }
  0x19   : > { %s2735_s7 = smov 16   ;;  %s2736_s8 = smov 20  }
  0x1a   : > { %s2587_s27 = smul.u32 432, %s179_s26  ;;  %s2737_s9 = smov 24  }
  0x1b   : > { %s2738_s21 = smov 28   ;;  %s2477_s11 = sshll.u32 %s2722_s15, 12 }
  0x1c   : > { %s2822_s30 = scalar_lea.vmem %s4324_s0, %s2587_s27  ;;  %s4265_s23 = scalar_lea.hbm %s4327_s3, %s2477_s11 }
  0x1d   : > { %v2825_v0 = vld [vmem:[%s2822_s30 + $0x19] sm:$0xff]  ;;  %v219_v1 = vld [vmem:[%s2822_s30 + $0x1] sm:$0xff]  ;;  %v220_v3 = vld [vmem:[%s2822_s30 + $0x9] sm:$0xff]  ;;  %s2740_s27 = smov [#allocation2]  }
  0x1e   : > { %517 = vrot.lane.b32.xlu1 %v2825_v0, %s2732_s4  ;;  %513 = vrot.lane.b32.xlu0 %v219_v1, %s2732_s4  ;;  %v2832_v2 = vld [vmem:[%s2822_s30 + $0x21] sm:$0xff]  ;;  %v2839_v4 = vld [vmem:[%s2822_s30 + $0x39] sm:$0xff]  ;;  %s2656_s28 = sshll.u32 %s2740_s27, 4  ;;  %s2657_s28 = int_to_ptr.vmem [resolvable:$false] %s2656_s28 }
  0x1f   : > { %v2842_v5 = vld [vmem:[%s2822_s30 + $0x31] sm:$0xff]  ;;  %v2852_v7 = vld [vmem:[%s2822_s30 + $0x49] sm:$0xff]  ;;  %v2860_v9 = vld [vmem:[%s2822_s30 + $0x61] sm:$0xff]  ;;  %s2658_s29 = scalar_lea.vmem %s2657_s28, 8192 }
  0x20   : > { %v2849_v6 = vld [vmem:[%s2822_s30 + $0x51] sm:$0xff]  ;;  %v228_v8 = vld [vmem:[%s2822_s30 + $0x69] sm:$0xff]  ;;  %4372 = vst [vmem:[#allocation5_spill] sm:$0xff] %v2860_v9  ;;  %v230_v10 = vld [vmem:[%s2822_s30 + $0x81] sm:$0xff] }
  0x21   : > { %v229_v11 = vld [vmem:[%s2822_s30 + $0x79] sm:$0xff]  ;;  %v231_v13 = vld [vmem:[%s2822_s30 + $0x91] sm:$0xff]  ;;  %v233_v15 = vld [vmem:[%s2822_s30 + $0xa9] sm:$0xff] }
  0x22   : > { %519 = vrot.lane.b32.xlu1 %v2832_v2, %s2732_s4  ;;  %515 = vrot.lane.b32.xlu0 %v220_v3, %s2732_s4  ;;  %v232_v12 = vld [vmem:[%s2822_s30 + $0x99] sm:$0xff]  ;;  %v234_v14 = vld [vmem:[%s2822_s30 + $0xb1] sm:$0xff] }
  0x23   : > { %v236_v16 = vld [vmem:[%s2822_s30 + $0xc9] sm:$0xff]  ;;  %v235_v17 = vld [vmem:[%s2822_s30 + $0xc1] sm:$0xff]  ;;  %v2885_v19 = vld [vmem:[%s2822_s30 + $0xd9] sm:$0xff] }
  0x24   : > { %v2882_v18 = vld [vmem:[%s2822_s30 + $0xe1] sm:$0xff]  ;;  %v2892_v20 = vld [vmem:[%s2822_s30 + $0xf9] sm:$0xff]  ;;  %v2895_v21 = vld [vmem:[%s2822_s30 + $0xf1] sm:$0xff] }
  0x25   : > { %v2902_v22 = vld [vmem:[%s2822_s30 + $0x111] sm:$0xff]  ;;  %v2905_v23 = vld [vmem:[%s2822_s30 + $0x109] sm:$0xff]  ;;  %v2915_v25 = vld [vmem:[%s2822_s30 + $0x121] sm:$0xff] }
  0x26   : > { %523 = vrot.lane.b32.xlu1 %v2839_v4, %s2732_s4  ;;  %521 = vrot.lane.b32.xlu0 %v2842_v5, %s2732_s4  ;;  %4373 = vst [vmem:[#allocation6_spill] sm:$0xff] %v2902_v22  ;;  %4374 = vst [vmem:[#allocation7_spill] sm:$0xff] %v2905_v23  ;;  %v2912_v24 = vld [vmem:[%s2822_s30 + $0x129] sm:$0xff]  ;;  %v246_v26 = vld [vmem:[%s2822_s30 + $0x141] sm:$0xff] }
  0x27   : > { %4375 = vst [vmem:[#allocation8_spill] sm:$0xff] %v2912_v24  ;;  %4376 = vst [vmem:[#allocation9_spill] sm:$0xff] %v2915_v25  ;;  %v245_v27 = vld [vmem:[%s2822_s30 + $0x139] sm:$0xff]  ;;  %v247_v29 = vld [vmem:[%s2822_s30 + $0x151] sm:$0xff] }
  0x28   : > { %v248_v28 = vld [vmem:[%s2822_s30 + $0x159] sm:$0xff]  ;;  %v250_v30 = vld [vmem:[%s2822_s30 + $0x171] sm:$0xff]  ;;  %v249_v31 = vld [vmem:[%s2822_s30 + $0x169] sm:$0xff] }
  0x29   : > { %v252_v32 = vld [vmem:[%s2822_s30 + $0xa] sm:$0xff]  ;;  %v251_v33 = vld [vmem:[%s2822_s30 + $0x2] sm:$0xff]  ;;  %v2941_v35 = vld [vmem:[%s2822_s30 + $0x1a] sm:$0xff] }
  0x2a   : > { %527 = vrot.lane.b32.xlu1 %v2849_v6, %s2732_s4  ;;  %525 = vrot.lane.b32.xlu0 %v2852_v7, %s2732_s4  ;;  %v2938_v34 = vld [vmem:[%s2822_s30 + $0x22] sm:$0xff]  ;;  %v2948_v36 = vld [vmem:[%s2822_s30 + $0x3a] sm:$0xff] }
  0x2b   : > { %4377 = vst [vmem:[#allocation10_spill] sm:$0xff] %v2948_v36  ;;  %v2951_v37 = vld [vmem:[%s2822_s30 + $0x32] sm:$0xff]  ;;  %v2961_v39 = vld [vmem:[%s2822_s30 + $0x4a] sm:$0xff]  ;;  %v2971_v41 = vld [vmem:[%s2822_s30 + $0x62] sm:$0xff] }
  0x2c   : > { %v2958_v38 = vld [vmem:[%s2822_s30 + $0x52] sm:$0xff]  ;;  %4379 = vst [vmem:[#allocation12_spill] sm:$0xff] %v2961_v39  ;;  %v2968_v40 = vld [vmem:[%s2822_s30 + $0x6a] sm:$0xff]  ;;  %4381 = vst [vmem:[#allocation14_spill] sm:$0xff] %v2971_v41 }
  0x2d   : > { %4378 = vst [vmem:[#allocation11_spill] sm:$0xff] %v2958_v38  ;;  %4380 = vst [vmem:[#allocation13_spill] sm:$0xff] %v2968_v40  ;;  %v262_v42 = vld [vmem:[%s2822_s30 + $0x82] sm:$0xff]  ;;  %v261_v43 = vld [vmem:[%s2822_s30 + $0x7a] sm:$0xff] }
  0x2e   : > { %531 = vrot.lane.b32.xlu1 %v228_v8, %s2732_s4  ;;  %529 = vrot.lane.b32.xlu0 %v2860_v9, %s2732_s4  ;;  %v264_v44 = vld [vmem:[%s2822_s30 + $0x9a] sm:$0xff]  ;;  %v263_v45 = vld [vmem:[%s2822_s30 + $0x92] sm:$0xff] }
  0x2f   : > { %v266_v46 = vld [vmem:[%s2822_s30 + $0xb2] sm:$0xff]  ;;  %v265_v47 = vld [vmem:[%s2822_s30 + $0xaa] sm:$0xff]  ;;  %v267_v49 = vld [vmem:[%s2822_s30 + $0xc2] sm:$0xff] }
  0x30   : > { %v268_v48 = vld [vmem:[%s2822_s30 + $0xca] sm:$0xff]  ;;  %v2994_v50 = vld [vmem:[%s2822_s30 + $0xe2] sm:$0xff]  ;;  %v2997_v51 = vld [vmem:[%s2822_s30 + $0xda] sm:$0xff] }
  0x31   : > { %v3004_v52 = vld [vmem:[%s2822_s30 + $0xfa] sm:$0xff]  ;;  %v3007_v53 = vld [vmem:[%s2822_s30 + $0xf2] sm:$0xff]  ;;  %v3017_v55 = vld [vmem:[%s2822_s30 + $0x10a] sm:$0xff] }
  0x32   : > { %535 = vrot.lane.b32.xlu1 %v230_v10, %s2732_s4  ;;  %533 = vrot.lane.b32.xlu0 %v229_v11, %s2732_s4  ;;  %4382 = vst [vmem:[#allocation15_spill] sm:$0xff] %v3004_v52  ;;  %4383 = vst [vmem:[#allocation16_spill] sm:$0xff] %v3007_v53  ;;  %v3014_v54 = vld [vmem:[%s2822_s30 + $0x112] sm:$0xff]  ;;  %v3024_v56 = vld [vmem:[%s2822_s30 + $0x12a] sm:$0xff] }
  0x33   : > { %4384 = vst [vmem:[#allocation17_spill] sm:$0xff] %v3014_v54  ;;  %4385 = vst [vmem:[#allocation18_spill] sm:$0xff] %v3017_v55  ;;  %v3027_v57 = vld [vmem:[%s2822_s30 + $0x122] sm:$0xff]  ;;  %v3035_v59 = vld [vmem:[%s2822_s30 + $0x13a] sm:$0xff] }
  0x34   : > { %4386 = vst [vmem:[#allocation19_spill] sm:$0xff] %v3024_v56  ;;  %4387 = vst [vmem:[#allocation20_spill] sm:$0xff] %v3027_v57  ;;  %v278_v58 = vld [vmem:[%s2822_s30 + $0x142] sm:$0xff]  ;;  %v280_v62 = vld [vmem:[%s2822_s30 + $0x15a] sm:$0xff] }
  0x35   : > { %4388 = vst [vmem:[#allocation21_spill] sm:$0xff] %v3035_v59  ;;  %v279_v63 = vld [vmem:[%s2822_s30 + $0x152] sm:$0xff]  ;;  %v281_v10 = vld [vmem:[%s2822_s30 + $0x16a] sm:$0xff] }
  0x36   : > { %539 = vrot.lane.b32.xlu1 %v232_v12, %s2732_s4  ;;  %537 = vrot.lane.b32.xlu0 %v231_v13, %s2732_s4  ;;  %v282_v8 = vld [vmem:[%s2822_s30 + $0x172] sm:$0xff] }
  0x3a   : > { %543 = vrot.lane.b32.xlu1 %v234_v14, %s2732_s4  ;;  %541 = vrot.lane.b32.xlu0 %v233_v15, %s2732_s4  ;;  %v3065_v15 = vld [vmem:[%s2822_s30 + $0x18] sm:$0xff] }
  0x3b   : > { %4393 = vst [vmem:[#allocation26_spill] sm:$0xff] %v3065_v15 }
  0x3e   : > { %547 = vrot.lane.b32.xlu1 %v236_v16, %s2732_s4  ;;  %545 = vrot.lane.b32.xlu0 %v235_v17, %s2732_s4  ;;  %v3068_v16 = vld [vmem:[%s2822_s30 + $0x20] sm:$0xff] }
  0x3f   : > { %4394 = vst [vmem:[#allocation27_spill] sm:$0xff] %v3068_v16 }
  0x42   : > { %551 = vrot.lane.b32.xlu1 %v2882_v18, %s2732_s4  ;;  %549 = vrot.lane.b32.xlu0 %v2885_v19, %s2732_s4 }
  0x46   : > { %555 = vrot.lane.b32.xlu1 %v2892_v20, %s2732_s4  ;;  %553 = vrot.lane.b32.xlu0 %v2895_v21, %s2732_s4 }
  0x4a   : > { %559 = vrot.lane.b32.xlu1 %v2902_v22, %s2732_s4  ;;  %557 = vrot.lane.b32.xlu0 %v2905_v23, %s2732_s4  ;;  %v3246_v23 = vld [vmem:[%s2822_s30 + $0x150] sm:$0xff] }
  0x4b   : > { %4407 = vst [vmem:[#allocation40_spill] sm:$0xff] %v3246_v23 }
  0x4e   : > { %563 = vrot.lane.b32.xlu1 %v2912_v24, %s2732_s4  ;;  %561 = vrot.lane.b32.xlu0 %v2915_v25, %s2732_s4  ;;  %v3226_v25 = vld [vmem:[%s2822_s30 + $0x140] sm:$0xff] }
  0x52   : > { %567 = vrot.lane.b32.xlu1 %v246_v26, %s2732_s4  ;;  %565 = vrot.lane.b32.xlu0 %v245_v27, %s2732_s4  ;;  %v3079_v27 = vld [vmem:[%s2822_s30 + $0x38] sm:$0xff] }
  0x56   : > { %571 = vrot.lane.b32.xlu1 %v248_v28, %s2732_s4  ;;  %569 = vrot.lane.b32.xlu0 %v247_v29, %s2732_s4  ;;  %v3082_v28 = vld [vmem:[%s2822_s30 + $0x30] sm:$0xff] }
  0x5a   : > { %575 = vrot.lane.b32.xlu1 %v250_v30, %s2732_s4  ;;  %573 = vrot.lane.b32.xlu0 %v249_v31, %s2732_s4  ;;  %v3093_v31 = vld [vmem:[%s2822_s30 + $0x50] sm:$0xff] }
  0x5e   : > { %643 = vrot.lane.b32.xlu1 %v252_v32, %s2733_s5  ;;  %641 = vrot.lane.b32.xlu0 %v251_v33, %s2733_s5  ;;  %v3096_v32 = vld [vmem:[%s2822_s30 + $0x48] sm:$0xff]  ;;  %v200_v33 = vld [vmem:[%s2822_s30 + $0x98] sm:$0xff] }
  0x62   : > { %647 = vrot.lane.b32.xlu1 %v2938_v34, %s2733_s5  ;;  %645 = vrot.lane.b32.xlu0 %v2941_v35, %s2733_s5 }
  0x66   : > { %651 = vrot.lane.b32.xlu1 %v2948_v36, %s2733_s5  ;;  %649 = vrot.lane.b32.xlu0 %v2951_v37, %s2733_s5 }
  0x6a   : > { %655 = vrot.lane.b32.xlu1 %v2958_v38, %s2733_s5  ;;  %653 = vrot.lane.b32.xlu0 %v2961_v39, %s2733_s5  ;;  %v3229_v38 = vld [vmem:[%s2822_s30 + $0x138] sm:$0xff] }
  0x6b   : > { %v3243_v39 = vld [vmem:[%s2822_s30 + $0x158] sm:$0xff] }
  0x6e   : > { %659 = vrot.lane.b32.xlu1 %v2968_v40, %s2733_s5  ;;  %657 = vrot.lane.b32.xlu0 %v2971_v41, %s2733_s5  ;;  %v3216_v41 = vld [vmem:[%s2822_s30 + $0x120] sm:$0xff] }
  0x72   : > { %663 = vrot.lane.b32.xlu1 %v262_v42, %s2733_s5  ;;  %661 = vrot.lane.b32.xlu0 %v261_v43, %s2733_s5  ;;  %v199_v42 = vld [vmem:[%s2822_s30 + $0x90] sm:$0xff] }
  0x76   : > { %667 = vrot.lane.b32.xlu1 %v264_v44, %s2733_s5  ;;  %665 = vrot.lane.b32.xlu0 %v263_v45, %s2733_s5  ;;  %v3105_v45 = vld [vmem:[%s2822_s30 + $0x68] sm:$0xff] }
  0x7a   : > { %671 = vrot.lane.b32.xlu1 %v266_v46, %s2733_s5  ;;  %669 = vrot.lane.b32.xlu0 %v265_v47, %s2733_s5  ;;  %v3108_v46 = vld [vmem:[%s2822_s30 + $0x60] sm:$0xff] }
  0x7e   : > { %675 = vrot.lane.b32.xlu1 %v268_v48, %s2733_s5  ;;  %673 = vrot.lane.b32.xlu0 %v267_v49, %s2733_s5  ;;  %v202_v49 = vld [vmem:[%s2822_s30 + $0xb0] sm:$0xff] }
  0x82   : > { %679 = vrot.lane.b32.xlu1 %v2994_v50, %s2733_s5  ;;  %677 = vrot.lane.b32.xlu0 %v2997_v51, %s2733_s5 }
  0x86   : > { %683 = vrot.lane.b32.xlu1 %v3004_v52, %s2733_s5  ;;  %681 = vrot.lane.b32.xlu0 %v3007_v53, %s2733_s5  ;;  %v3257_v52 = vld [vmem:[%s2822_s30 + $0x168] sm:$0xff] }
  0x87   : > { %4410 = vst [vmem:[#allocation43_spill] sm:$0xff] %v3257_v52 }
  0x8a   : > { %687 = vrot.lane.b32.xlu1 %v3014_v54, %s2733_s5  ;;  %685 = vrot.lane.b32.xlu0 %v3017_v55, %s2733_s5 }
  0x8e   : > { %691 = vrot.lane.b32.xlu1 %v3024_v56, %s2733_s5  ;;  %689 = vrot.lane.b32.xlu0 %v3027_v57, %s2733_s5  ;;  %v3213_v56 = vld [vmem:[%s2822_s30 + $0x128] sm:$0xff]  ;;  %v218_v57 = vld [vmem:[%s2822_s30 + $0x170] sm:$0xff] }
  0x90   : > { %v3037_v60 = vpop.permute.xlu1 %517  ;;  %v3039_v61 = vpop.permute.xlu0 %513 }
  0x91   : > { %4389 = vst [vmem:[#allocation22_spill] sm:$0xff] %v3037_v60  ;;  %4390 = vst [vmem:[#allocation23_spill] sm:$0xff] %v3039_v61 }
  0x92   : > { %695 = vrot.lane.b32.xlu1 %v278_v58, %s2733_s5  ;;  %693 = vrot.lane.b32.xlu0 %v3035_v59, %s2733_s5  ;;  %v201_v58 = vld [vmem:[%s2822_s30 + $0xa8] sm:$0xff]  ;;  %v3188_v59 = vld [vmem:[%s2822_s30 + $0xf8] sm:$0xff] }
  0x94   : > { %v3046_v1 = vpop.permute.xlu1 %519  ;;  %v3048_v3 = vpop.permute.xlu0 %515 }
  0x95   : > { %4391 = vst [vmem:[#allocation24_spill] sm:$0xff] %v3046_v1  ;;  %4392 = vst [vmem:[#allocation25_spill] sm:$0xff] %v3048_v3  ;;  %v3156_v3 = vld [vmem:[%s2822_s30 + $0xc8] sm:$0xff] }
  0x96   : > { %699 = vrot.lane.b32.xlu1 %v280_v62, %s2733_s5  ;;  %697 = vrot.lane.b32.xlu0 %v279_v63, %s2733_s5  ;;  %4399 = vst [vmem:[#allocation32_spill] sm:$0xff] %v3156_v3 }
  0x98   : > { %v3054_v11 = vpop.permute.xlu1 %523  ;;  %v3056_v12 = vpop.permute.xlu0 %521 }
  0x9a   : > { %703 = vrot.lane.b32.xlu1 %v282_v8, %s2733_s5  ;;  %701 = vrot.lane.b32.xlu0 %v281_v10, %s2733_s5  ;;  %v3123_v8 = vld [vmem:[%s2822_s30 + $0x80] sm:$0xff]  ;;  %v3126_v10 = vld [vmem:[%s2822_s30 + $0x78] sm:$0xff] }
  0x9c   : > { %v3060_v13 = vpop.permute.xlu1 %527  ;;  %v3062_v14 = vpop.permute.xlu0 %525 }
  0x9e   : > { %771 = vrot.lane.b32.xlu1 %v3068_v16, %s2734_s6  ;;  %769 = vrot.lane.b32.xlu0 %v3065_v15, %s2734_s6  ;;  %v3151_v15 = vld [vmem:[%s2822_s30 + $0xf0] sm:$0xff] }
  0xa0   : > { %v3074_v17 = vpop.permute.xlu1 %531  ;;  %v3076_v26 = vpop.permute.xlu0 %529 }
  0xa2   : > { %775 = vrot.lane.b32.xlu1 %v3079_v27, %s2734_s6  ;;  %773 = vrot.lane.b32.xlu0 %v3082_v28, %s2734_s6 }
  0xa4   : > { %v3088_v29 = vpop.permute.xlu1 %535  ;;  %v3090_v30 = vpop.permute.xlu0 %533 }
  0xa6   : > { %779 = vrot.lane.b32.xlu1 %v3093_v31, %s2734_s6  ;;  %777 = vrot.lane.b32.xlu0 %v3096_v32, %s2734_s6 }
  0xa8   : > { %v540_v43 = vpop.permute.xlu1 %539  ;;  %v538_v44 = vpop.permute.xlu0 %537 }
  0xa9   : > { %v3111_v47 = vsel %vm1505_vm0, %v200_v33, %v540_v43  ;;  %v3114_v48 = vsel %vm1505_vm0, %v199_v42, %v538_v44 }
  0xaa   : > { %783 = vrot.lane.b32.xlu1 %v3105_v45, %s2734_s6  ;;  %781 = vrot.lane.b32.xlu0 %v3108_v46, %s2734_s6 }
  0xac   : > { %v544_v62 = vpop.permute.xlu1 %543  ;;  %v542_v63 = vpop.permute.xlu0 %541 }
  0xad   : > { %v3129_v43 = vsel %vm1505_vm0, %v202_v49, %v544_v62  ;;  %v3132_v44 = vsel %vm1505_vm0, %v201_v58, %v542_v63 }
  0xae   : > { %787 = vrot.lane.b32.xlu1 %v3123_v8, %s2734_s6  ;;  %785 = vrot.lane.b32.xlu0 %v3126_v10, %s2734_s6 }
  0xb0   : > { %v3138_v16 = vpop.permute.xlu1 %547  ;;  %v3140_v1 = vpop.permute.xlu0 %545 }
  0xb1   : > { %4395 = vst [vmem:[#allocation28_spill] sm:$0xff] %v3138_v16  ;;  %4396 = vst [vmem:[#allocation29_spill] sm:$0xff] %v3140_v1  ;;  %v3202_v1 = vld [vmem:[%s2822_s30 + $0x108] sm:$0xff] }
  0xb2   : > { %791 = vrot.lane.b32.xlu1 %v200_v33, %s2734_s6  ;;  %789 = vrot.lane.b32.xlu0 %v199_v42, %s2734_s6  ;;  %v3159_v33 = vld [vmem:[%s2822_s30 + $0xc0] sm:$0xff] }
  0xb3   : > { %4400 = vst [vmem:[#allocation33_spill] sm:$0xff] %v3159_v33 }
  0xb4   : > { %v3144_v62 = vpop.permute.xlu1 %551  ;;  %v3146_v63 = vpop.permute.xlu0 %549 }
  0xb5   : > { %4397 = vst [vmem:[#allocation30_spill] sm:$0xff] %v3144_v62  ;;  %4398 = vst [vmem:[#allocation31_spill] sm:$0xff] %v3146_v63  ;;  %v3174_v62 = vld [vmem:[%s2822_s30 + $0xe0] sm:$0xff]  ;;  %v3177_v63 = vld [vmem:[%s2822_s30 + $0xd8] sm:$0xff] }
  0xb6   : > { %795 = vrot.lane.b32.xlu1 %v202_v49, %s2734_s6  ;;  %793 = vrot.lane.b32.xlu0 %v201_v58, %s2734_s6  ;;  %4401 = vst [vmem:[#allocation34_spill] sm:$0xff] %v3174_v62  ;;  %4402 = vst [vmem:[#allocation35_spill] sm:$0xff] %v3177_v63 }
  0xb8   : > { %v3153_v60 = vpop.permute.xlu1 %555  ;;  %v554_v16 = vpop.permute.xlu0 %553 }
  0xb9   : > { %v3163_v42 = vsel %vm1505_vm0, %v3151_v15, %v554_v16 }
  0xba   : > { %799 = vrot.lane.b32.xlu1 %v3156_v3, %s2734_s6  ;;  %797 = vrot.lane.b32.xlu0 %v3159_v33, %s2734_s6 }
  0xbc   : > { %v3169_v49 = vpop.permute.xlu1 %559  ;;  %v3171_v58 = vpop.permute.xlu0 %557 }
  0xbe   : > { %803 = vrot.lane.b32.xlu1 %v3174_v62, %s2734_s6  ;;  %801 = vrot.lane.b32.xlu0 %v3177_v63, %s2734_s6  ;;  %v3199_v63 = vld [vmem:[%s2822_s30 + $0x110] sm:$0xff] }
  0xc0   : > { %v3183_v16 = vpop.permute.xlu1 %563  ;;  %v3185_v3 = vpop.permute.xlu0 %561 }
  0xc2   : > { %807 = vrot.lane.b32.xlu1 %v3188_v59, %s2734_s6  ;;  %805 = vrot.lane.b32.xlu0 %v3151_v15, %s2734_s6 }
  0xc4   : > { %v3194_v33 = vpop.permute.xlu1 %567  ;;  %v3196_v62 = vpop.permute.xlu0 %565 }
  0xc6   : > { %811 = vrot.lane.b32.xlu1 %v3199_v63, %s2734_s6  ;;  %809 = vrot.lane.b32.xlu0 %v3202_v1, %s2734_s6 }
  0xc8   : > { %v3208_v61 = vpop.permute.xlu1 %571  ;;  %v3210_v40 = vpop.permute.xlu0 %569 }
  0xca   : > { %815 = vrot.lane.b32.xlu1 %v3213_v56, %s2734_s6  ;;  %813 = vrot.lane.b32.xlu0 %v3216_v41, %s2734_s6 }
  0xcc   : > { %v576_v24 = vpop.permute.xlu1 %575  ;;  %v3223_v9 = vpop.permute.xlu0 %573 }
  0xcd   : > { %4403 = vst [vmem:[#allocation36_spill] sm:$0xff] %v3223_v9  ;;  %v3232_v54 = vsel %vm1505_vm0, %v218_v57, %v576_v24  ;;  %v1510_v9 = vsel %vm1505_vm0, %v3082_v28, %v3056_v12  ;;  %v1512_v12 = vsel %vm1505_vm0, %v3096_v32, %v3062_v14 }
  0xce   : > { %4404 = vst [vmem:[#allocation37_spill] sm:$0xff] %v3232_v54  ;;  %819 = vrot.lane.b32.xlu1 %v3226_v25, %s2734_s6  ;;  %817 = vrot.lane.b32.xlu0 %v3229_v38, %s2734_s6  ;;  %v1511_v54 = vsel %vm1505_vm0, %v3079_v27, %v3054_v11  ;;  %v1513_v11 = vsel %vm1505_vm0, %v3093_v31, %v3060_v13 }
  0xd0   : > { %v3238_v55 = vpop.permute.xlu1 %643  ;;  %v3240_v22 = vpop.permute.xlu0 %641 }
  0xd1   : > { %4405 = vst [vmem:[#allocation38_spill] sm:$0xff] %v3238_v55  ;;  %4406 = vst [vmem:[#allocation39_spill] sm:$0xff] %v3240_v22  ;;  %v2277_v55 = vld [vmem:[%s2822_s30 + $0x188] sm:$0xff]  ;;  %v2276_v22 = vld [vmem:[%s2822_s30 + $0x180] sm:$0xff] }
  0xd2   : > { %823 = vrot.lane.b32.xlu1 %v3243_v39, %s2734_s6  ;;  %821 = vrot.lane.b32.xlu0 %v3246_v23, %s2734_s6 }
  0xd4   : > { %v3252_v24 = vpop.permute.xlu1 %647  ;;  %v3254_v36 = vpop.permute.xlu0 %645 }
  0xd5   : > { %4408 = vst [vmem:[#allocation41_spill] sm:$0xff] %v3252_v24  ;;  %4409 = vst [vmem:[#allocation42_spill] sm:$0xff] %v3254_v36 }
  0xd6   : > { %827 = vrot.lane.b32.xlu1 %v218_v57, %s2734_s6  ;;  %825 = vrot.lane.b32.xlu0 %v3257_v52, %s2734_s6 }
  0xd8   : > { %v652_v24 = vpop.permute.xlu1 %651  ;;  %v650_v36 = vpop.permute.xlu0 %649 }
  0xd9   : > { %v3271_v53 = vsel %vm1538_vm1, %v1511_v54, %v652_v24  ;;  %v3274_v57 = vsel %vm1538_vm1, %v1510_v9, %v650_v36  ;;  %v1514_v36 = vsel %vm1505_vm0, %v3108_v46, %v3076_v26 }
  0xda   : > { %831 = vrot.lane.b32.xlu1 %v2277_v55, %s2734_s6  ;;  %829 = vrot.lane.b32.xlu0 %v2276_v22, %s2734_s6  ;;  %v1515_v22 = vsel %vm1505_vm0, %v3105_v45, %v3074_v17  ;;  %s2739_s6 = smov 32  }
  0xdc   : > { %v656_v52 = vpop.permute.xlu1 %655  ;;  %v654_v23 = vpop.permute.xlu0 %653 }
  0xdd   : > { %v3285_v54 = vsel %vm1538_vm1, %v1513_v11, %v656_v52  ;;  %v3288_v9 = vsel %vm1538_vm1, %v1512_v12, %v654_v23 }
  0xde   : > { %899 = vrot.lane.b32.xlu1 %v2832_v2, %s2735_s7  ;;  %897 = vrot.lane.b32.xlu0 %v2825_v0, %s2735_s7  ;;  %v1517_v0 = vsel %vm1505_vm0, %v3123_v8, %v3088_v29  ;;  %v1516_v2 = vsel %vm1505_vm0, %v3126_v10, %v3090_v30 }
  0xe0   : > { %v660_v52 = vpop.permute.xlu1 %659  ;;  %v658_v55 = vpop.permute.xlu0 %657 }
  0xe1   : > { %v3301_v23 = vsel %vm1538_vm1, %v1515_v22, %v660_v52  ;;  %v3304_v13 = vsel %vm1538_vm1, %v1514_v36, %v658_v55 }
  0xe2   : > { %903 = vrot.lane.b32.xlu1 %v2839_v4, %s2735_s7  ;;  %901 = vrot.lane.b32.xlu0 %v2842_v5, %s2735_s7 }
  0xe4   : > { %v664_v14 = vpop.permute.xlu1 %663  ;;  %v662_v17 = vpop.permute.xlu0 %661 }
  0xe5   : > { %v3317_v26 = vsel %vm1538_vm1, %v1517_v0, %v664_v14  ;;  %v3320_v24 = vsel %vm1538_vm1, %v1516_v2, %v662_v17  ;;  %v1531_v17 = vsel %vm1505_vm0, %v3213_v56, %v3183_v16  ;;  %v1533_v16 = vsel %vm1505_vm0, %v3226_v25, %v3194_v33  ;;  %v4411_v33 = vld [vmem:[#allocation40_spill] sm:$0xff] }
  0xe6   : > { %907 = vrot.lane.b32.xlu1 %v2849_v6, %s2735_s7  ;;  %905 = vrot.lane.b32.xlu0 %v2852_v7, %s2735_s7 }
  0xe8   : > { %v668_v11 = vpop.permute.xlu1 %667  ;;  %v666_v29 = vpop.permute.xlu0 %665 }
  0xe9   : > { %v3328_v12 = vsel %vm1538_vm1, %v3111_v47, %v668_v11  ;;  %v3332_v30 = vsel %vm1538_vm1, %v3114_v48, %v666_v29  ;;  %v1530_v11 = vsel %vm1505_vm0, %v3216_v41, %v3185_v3  ;;  %v1773_v3 = vld [vmem:[%s4325_s1 + $0x20] sm:$0xf] }
  0xea   : > { %931 = vrot.lane.b32.xlu1 %v2882_v18, %s2735_s7  ;;  %929 = vrot.lane.b32.xlu0 %v2885_v19, %s2735_s7 }
  0xec   : > { %v672_v22 = vpop.permute.xlu1 %671  ;;  %v670_v36 = vpop.permute.xlu0 %669 }
  0xed   : > { %v3340_v52 = vsel %vm1538_vm1, %v3129_v43, %v672_v22  ;;  %v3344_v47 = vsel %vm1538_vm1, %v3132_v44, %v670_v36 }
  0xee   : > { %1057 = vrot.lane.b32.xlu1 %v2997_v51, %s2736_s8  ;;  %1025 = vrot.lane.b32.xlu0 %v2941_v35, %s2736_s8  ;;  %v1527_v35 = vsel %vm1505_vm0, %v3188_v59, %v3153_v60  ;;  %v1770_v60 = vld [vmem:[%s4325_s1 + $0x8] sm:$0xff] }
  0xf0   : > { %v3350_v18 = vpop.permute.xlu1 %675  ;;  %v3352_v19 = vpop.permute.xlu0 %673 }
  0xf2   : > { %1059 = vrot.lane.b32.xlu1 %v2994_v50, %s2736_s8  ;;  %1027 = vrot.lane.b32.xlu0 %v2938_v34, %s2736_s8 }
  0xf4   : > { %v3358_v48 = vpop.permute.xlu1 %679  ;;  %v3360_v43 = vpop.permute.xlu0 %677 }
  0xf6   : > { %1185 = vrot.lane.b32.xlu1 %v3151_v15, %s2737_s9  ;;  %1153 = vrot.lane.b32.xlu0 %v3082_v28, %s2737_s9  ;;  %v1769_v15 = vld [vmem:[%s4325_s1] sm:$0xff] }
  0xf7   : > { %v2573_v28 = vpack.c.bf16 %v1770_v60, %v1769_v15  ;;  %v1534_v15 = vsel %vm1505_vm0, %v4411_v33, %v3210_v40 }
  0xf8   : > { %v684_v51 = vpop.permute.xlu1 %683  ;;  %v682_v50 = vpop.permute.xlu0 %681 }
  0xf9   : > { %v3370_v44 = vsel %vm1538_vm1, %v1527_v35, %v684_v51  ;;  %v3374_v34 = vsel %vm1538_vm1, %v3163_v42, %v682_v50  ;;  %v1529_v42 = vsel %vm1505_vm0, %v3199_v63, %v3169_v49  ;;  %2574 = vmatprep.subr.bf16.mxu0 %v2573_v28  ;;  %2581 = vmatprep.subr.bf16.mxu1 %v2573_v28  ;;  %v1771_v49 = vld [vmem:[%s4325_s1 + $0x10] sm:$0xff] }
  0xfa   : > { %1187 = vrot.lane.b32.xlu1 %v3188_v59, %s2737_s9  ;;  %1155 = vrot.lane.b32.xlu0 %v3079_v27, %s2737_s9  ;;  %v1528_v59 = vsel %vm1505_vm0, %v3202_v1, %v3171_v58  ;;  %v1772_v58 = vld [vmem:[%s4325_s1 + $0x18] sm:$0xff]  ;;  %v1532_v35 = vsel %vm1505_vm0, %v3229_v38, %v3196_v62  ;;  %v1535_v62 = vsel %vm1505_vm0, %v3243_v39, %v3208_v61  ;;  %v4414_v61 = vld [vmem:[#allocation43_spill] sm:$0xff] }
  0xfb   : > { %2576 = vmatpush3.bf16.msra.mxu0 %v2573_v28  ;;  %2584 = vmatpush3.bf16.msra.mxu1 %v2573_v28  ;;  %v2577_v14 = vpack.c.bf16 %v1772_v58, %v1771_v49 }
  0xfc   : > { %v688_v55 = vpop.permute.xlu1 %687  ;;  %v686_v0 = vpop.permute.xlu0 %685 }
  0xfd   : > { %v3393_v27 = vsel %vm1538_vm1, %v1529_v42, %v688_v55  ;;  %v3396_v2 = vsel %vm1538_vm1, %v1528_v59, %v686_v0  ;;  %2578 = vmatprep.subr.bf16.mxu0 %v2577_v14  ;;  %2582 = vmatprep.subr.bf16.mxu1 %v2577_v14  ;;  %v4412_v55 = vld [vmem:[#allocation16_spill] sm:$0xff] }
  0xfe   : > { %1313 = vrot.lane.b32.xlu1 %v2895_v21, %s2738_s21  ;;  %1281 = vrot.lane.b32.xlu0 %v2842_v5, %s2738_s21  ;;  %v4413_v0 = vld [vmem:[#allocation36_spill] sm:$0xff] }
  0xff   : > { %2580 = vmatpush3.bf16.msra.mxu0 %v2577_v14  ;;  %2585 = vmatpush3.bf16.msra.mxu1 %v2577_v14  ;;  %v1536_v49 = vsel %vm1505_vm0, %v4414_v61, %v4413_v0  ;;  %v4415_v14 = vld [vmem:[#allocation37_spill] sm:$0xff] }
 0x100   : > { %v692_v5 = vpop.permute.xlu1 %691  ;;  %v690_v29 = vpop.permute.xlu0 %689  ;;  %2523 = vmatprep.subr.msk.mxu0 %vm1878_vm2, %v1773_v3  ;;  %2583 = vmatprep.subr.msk.mxu1 %vm1878_vm2, %v1773_v3 }
 0x101   : > { %v3415_v22 = vsel %vm1538_vm1, %v1531_v17, %v692_v5  ;;  %v3418_v36 = vsel %vm1538_vm1, %v1530_v11, %v690_v29  ;;  %v4416_v29 = vld [vmem:[#allocation15_spill] sm:$0xff] }
 0x102   : > { %1283 = vrot.lane.b32.xlu1 %v2839_v4, %s2738_s21  ;;  %933 = vrot.lane.b32.xlu0 %v2895_v21, %s2735_s7 }
 0x103   : > { %2524 = vmatpush3.msk.msra.mxu0 %vm1878_vm2, %v1773_v3  ;;  %2586 = vmatpush3.msk.msra.mxu1 %vm1878_vm2, %v1773_v3  ;;  %v4417_v3 = vld [vmem:[#allocation10_spill] sm:$0xff] }
 0x104   : > { %v696_v51 = vpop.permute.xlu1 %695  ;;  %v694_v4 = vpop.permute.xlu0 %693 }
 0x105   : > { %v3434_v21 = vsel %vm1538_vm1, %v1533_v16, %v696_v51  ;;  %v3437_v50 = vsel %vm1538_vm1, %v1532_v35, %v694_v4 }
 0x106   : > { %1409 = vrot.lane.b32.xlu1 %v2951_v37, %s2739_s6  ;;  %1315 = vrot.lane.b32.xlu0 %v2892_v20, %s2738_s21 }
 0x108   : > { %v700_v60 = vpop.permute.xlu1 %699  ;;  %v698_v28 = vpop.permute.xlu0 %697 }
 0x109   : > { %v3450_v42 = vsel %vm1538_vm1, %v1535_v62, %v700_v60  ;;  %v3453_v59 = vsel %vm1538_vm1, %v1534_v15, %v698_v28 }
 0x10a   : > { %935 = vrot.lane.b32.xlu1 %v2892_v20, %s2735_s7  ;;  %1441 = vrot.lane.b32.xlu0 %v4412_v55, %s2739_s6 }
 0x10c   : > { %v704_v58 = vpop.permute.xlu1 %703  ;;  %v702_v40 = vpop.permute.xlu0 %701 }
 0x10d   : > { %v3464_v17 = vsel %vm1538_vm1, %v4415_v14, %v704_v58  ;;  %v3467_v11 = vsel %vm1538_vm1, %v1536_v49, %v702_v40  ;;  %v4421_v49 = vld [vmem:[#allocation12_spill] sm:$0xff] }
 0x10e   : > { %1061 = vrot.lane.b32.xlu1 %v4412_v55, %s2736_s8  ;;  %1029 = vrot.lane.b32.xlu0 %v2951_v37, %s2736_s8  ;;  %v4418_v55 = vld [vmem:[#allocation7_spill] sm:$0xff] }
 0x110   : > { %v3473_v20 = vpop.permute.xlu1 %771  ;;  %v3475_v5 = vpop.permute.xlu0 %769 }
 0x112   : > { %1443 = vrot.lane.b32.xlu1 %v4416_v29, %s2739_s6  ;;  %1411 = vrot.lane.b32.xlu0 %v4417_v3, %s2739_s6 }
 0x114   : > { %v3481_v16 = vpop.permute.xlu1 %775  ;;  %v3483_v35 = vpop.permute.xlu0 %773 }
 0x116   : > { %1063 = vrot.lane.b32.xlu1 %v4416_v29, %s2736_s8  ;;  %1031 = vrot.lane.b32.xlu0 %v4417_v3, %s2736_s8  ;;  %v4426_v3 = vld [vmem:[#allocation17_spill] sm:$0xff] }
 0x118   : > { %v780_v37 = vpop.permute.xlu1 %779  ;;  %v778_v51 = vpop.permute.xlu0 %777 }
 0x119   : > { %v3491_v4 = vsel %vm1571_vm3, %v3271_v53, %v780_v37  ;;  %v3495_v62 = vsel %vm1571_vm3, %v3274_v57, %v778_v51  ;;  %v4427_v37 = vld [vmem:[#allocation11_spill] sm:$0xff] }
 0x11a   : > { %1189 = vrot.lane.b32.xlu1 %v3202_v1, %s2737_s9  ;;  %1157 = vrot.lane.b32.xlu0 %v3096_v32, %s2737_s9 }
 0x11c   : > { %v784_v15 = vpop.permute.xlu1 %783  ;;  %v782_v60 = vpop.permute.xlu0 %781 }
 0x11d   : > { %v3503_v28 = vsel %vm1571_vm3, %v3285_v54, %v784_v15  ;;  %v3507_v53 = vsel %vm1571_vm3, %v3288_v9, %v782_v60 }
 0x11e   : > { %1191 = vrot.lane.b32.xlu1 %v3199_v63, %s2737_s9  ;;  %1159 = vrot.lane.b32.xlu0 %v3093_v31, %s2737_s9 }
 0x120   : > { %v788_v1 = vpop.permute.xlu1 %787  ;;  %v786_v57 = vpop.permute.xlu0 %785 }
 0x121   : > { %v3515_v32 = vsel %vm1571_vm3, %v3301_v23, %v788_v1  ;;  %v3519_v54 = vsel %vm1571_vm3, %v3304_v13, %v786_v57 }
 0x122   : > { %1317 = vrot.lane.b32.xlu1 %v4418_v55, %s2738_s21  ;;  %1285 = vrot.lane.b32.xlu0 %v2852_v7, %s2738_s21 }
 0x124   : > { %v792_v63 = vpop.permute.xlu1 %791  ;;  %v790_v9 = vpop.permute.xlu0 %789 }
 0x125   : > { %v3527_v31 = vsel %vm1571_vm3, %v3317_v26, %v792_v63  ;;  %v3531_v23 = vsel %vm1571_vm3, %v3320_v24, %v790_v9  ;;  %v4422_v24 = vld [vmem:[#allocation6_spill] sm:$0xff] }
 0x126   : > { %1287 = vrot.lane.b32.xlu1 %v2849_v6, %s2738_s21  ;;  %937 = vrot.lane.b32.xlu0 %v4418_v55, %s2735_s7 }
 0x128   : > { %v796_v13 = vpop.permute.xlu1 %795  ;;  %v794_v0 = vpop.permute.xlu0 %793 }
 0x129   : > { %v3539_v7 = vsel %vm1571_vm3, %v3328_v12, %v796_v13  ;;  %v3543_v26 = vsel %vm1571_vm3, %v3332_v30, %v794_v0  ;;  %v4425_v30 = vld [vmem:[#allocation18_spill] sm:$0xff]  ;;  %v4429_v0 = vld [vmem:[#allocation5_spill] sm:$0xff] }
 0x12a   : > { %4419 = vst [vmem:[#allocation40_spill] sm:$0xff] %v3539_v7  ;;  %4420 = vst [vmem:[#allocation16_spill] sm:$0xff] %v3543_v26  ;;  %1413 = vrot.lane.b32.xlu1 %v4421_v49, %s2739_s6  ;;  %1319 = vrot.lane.b32.xlu0 %v4422_v24, %s2738_s21  ;;  %v4442_v26 = vld [vmem:[#allocation21_spill] sm:$0xff] }
 0x12c   : > { %v800_v6 = vpop.permute.xlu1 %799  ;;  %v798_v58 = vpop.permute.xlu0 %797 }
 0x12d   : > { %v3551_v40 = vsel %vm1571_vm3, %v3340_v52, %v800_v6  ;;  %v3555_v12 = vsel %vm1571_vm3, %v3344_v47, %v798_v58 }
 0x12e   : > { %4423 = vst [vmem:[#allocation36_spill] sm:$0xff] %v3551_v40  ;;  %4424 = vst [vmem:[#allocation43_spill] sm:$0xff] %v3555_v12  ;;  %939 = vrot.lane.b32.xlu1 %v4422_v24, %s2735_s7  ;;  %1445 = vrot.lane.b32.xlu0 %v4425_v30, %s2739_s6  ;;  %v2397_v40 = vld [vmem:[%s2822_s30 + $0x141] sm:$0xff] }
 0x130   : > { %v3561_v14 = vpop.permute.xlu1 %803  ;;  %v3563_v29 = vpop.permute.xlu0 %801 }
 0x132   : > { %1065 = vrot.lane.b32.xlu1 %v4425_v30, %s2736_s8  ;;  %1033 = vrot.lane.b32.xlu0 %v4421_v49, %s2736_s8 }
 0x134   : > { %v3569_v52 = vpop.permute.xlu1 %807  ;;  %v3571_v47 = vpop.permute.xlu0 %805 }
 0x136   : > { %1447 = vrot.lane.b32.xlu1 %v4426_v3, %s2739_s6  ;;  %1415 = vrot.lane.b32.xlu0 %v4427_v37, %s2739_s6 }
 0x138   : > { %v812_v51 = vpop.permute.xlu1 %811  ;;  %v810_v15 = vpop.permute.xlu0 %809 }
 0x139   : > { %v3579_v60 = vsel %vm1571_vm3, %v3370_v44, %v812_v51  ;;  %v3583_v1 = vsel %vm1571_vm3, %v3374_v34, %v810_v15  ;;  %v4434_v51 = vld [vmem:[#allocation20_spill] sm:$0xff]  ;;  %v4435_v15 = vld [vmem:[#allocation14_spill] sm:$0xff] }
 0x13a   : > { %1067 = vrot.lane.b32.xlu1 %v4426_v3, %s2736_s8  ;;  %1035 = vrot.lane.b32.xlu0 %v4427_v37, %s2736_s8  ;;  %v4433_v3 = vld [vmem:[#allocation8_spill] sm:$0xff] }
 0x13c   : > { %v816_v57 = vpop.permute.xlu1 %815  ;;  %v814_v55 = vpop.permute.xlu0 %813 }
 0x13d   : > { %v3591_v63 = vsel %vm1571_vm3, %v3393_v27, %v816_v57  ;;  %v3595_v44 = vsel %vm1571_vm3, %v3396_v2, %v814_v55 }
 0x13e   : > { %1193 = vrot.lane.b32.xlu1 %v3216_v41, %s2737_s9  ;;  %1161 = vrot.lane.b32.xlu0 %v3108_v46, %s2737_s9 }
 0x140   : > { %v820_v34 = vpop.permute.xlu1 %819  ;;  %v818_v9 = vpop.permute.xlu0 %817 }
 0x141   : > { %v3603_v13 = vsel %vm1571_vm3, %v3415_v22, %v820_v34  ;;  %v3607_v27 = vsel %vm1571_vm3, %v3418_v36, %v818_v9  ;;  %v4428_v36 = vld [vmem:[#allocation9_spill] sm:$0xff] }
 0x142   : > { %1195 = vrot.lane.b32.xlu1 %v3213_v56, %s2737_s9  ;;  %1163 = vrot.lane.b32.xlu0 %v3105_v45, %s2737_s9  ;;  %v2284_v56 = vld [vmem:[%s2822_s30 + $0x61] sm:$0xff] }
 0x144   : > { %v824_v41 = vpop.permute.xlu1 %823  ;;  %v822_v2 = vpop.permute.xlu0 %821 }
 0x145   : > { %v3615_v46 = vsel %vm1571_vm3, %v3434_v21, %v824_v41  ;;  %v3619_v22 = vsel %vm1571_vm3, %v3437_v50, %v822_v2  ;;  %v2379_v50 = vld [vmem:[%s2822_s30 + $0x69] sm:$0xff]  ;;  %v4437_v2 = vld [vmem:[#allocation13_spill] sm:$0xff] }
 0x146   : > { %1321 = vrot.lane.b32.xlu1 %v4428_v36, %s2738_s21  ;;  %1289 = vrot.lane.b32.xlu0 %v4429_v0, %s2738_s21  ;;  %v4436_v41 = vld [vmem:[#allocation19_spill] sm:$0xff] }
 0x148   : > { %v828_v49 = vpop.permute.xlu1 %827  ;;  %v826_v24 = vpop.permute.xlu0 %825 }
 0x149   : > { %v3628_v45 = vsel %vm1571_vm3, %v3450_v42, %v828_v49  ;;  %v3632_v21 = vsel %vm1571_vm3, %v3453_v59, %v826_v24 }
 0x14a   : > { %4430 = vst [vmem:[#allocation37_spill] sm:$0xff] %v3628_v45  ;;  %941 = vrot.lane.b32.xlu1 %v4428_v36, %s2735_s7  ;;  %909 = vrot.lane.b32.xlu0 %v2284_v56, %s2735_s7 }
 0x14c   : > { %v832_v6 = vpop.permute.xlu1 %831  ;;  %v830_v58 = vpop.permute.xlu0 %829 }
 0x14d   : > { %v3640_v30 = vsel %vm1571_vm3, %v3464_v17, %v832_v6  ;;  %v3644_v42 = vsel %vm1571_vm3, %v3467_v11, %v830_v58  ;;  %v2396_v6 = vld [vmem:[%s2822_s30 + $0x139] sm:$0xff] }
 0x14e   : > { %4431 = vst [vmem:[#allocation15_spill] sm:$0xff] %v3640_v30  ;;  %4432 = vst [vmem:[#allocation10_spill] sm:$0xff] %v3644_v42  ;;  %1323 = vrot.lane.b32.xlu1 %v4433_v3, %s2738_s21  ;;  %1291 = vrot.lane.b32.xlu0 %v2379_v50, %s2738_s21  ;;  %v2380_v58 = vld [vmem:[%s2822_s30 + $0x79] sm:$0xff]  ;;  %v2381_v30 = vld [vmem:[%s2822_s30 + $0x81] sm:$0xff] }
 0x150   : > { %v3649_v59 = vpop.permute.xlu1 %899  ;;  %v898_v37 = vpop.permute.xlu0 %897 }
 0x152   : > { %1449 = vrot.lane.b32.xlu1 %v4434_v51, %s2739_s6  ;;  %1417 = vrot.lane.b32.xlu0 %v4435_v15, %s2739_s6 }
 0x154   : > { %v3655_v17 = vpop.permute.xlu1 %903  ;;  %v3657_v57 = vpop.permute.xlu0 %901 }
 0x156   : > { %943 = vrot.lane.b32.xlu1 %v4433_v3, %s2735_s7  ;;  %911 = vrot.lane.b32.xlu0 %v2379_v50, %s2735_s7 }
 0x158   : > { %v3662_v11 = vpop.permute.xlu1 %907  ;;  %v3664_v55 = vpop.permute.xlu0 %905 }
 0x15a   : > { %1069 = vrot.lane.b32.xlu1 %v4434_v51, %s2736_s8  ;;  %1037 = vrot.lane.b32.xlu0 %v4435_v15, %s2736_s8 }
 0x15c   : > { %v3670_v34 = vpop.permute.xlu1 %931  ;;  %v930_v9 = vpop.permute.xlu0 %929 }
 0x15e   : > { %1451 = vrot.lane.b32.xlu1 %v4436_v41, %s2739_s6  ;;  %1419 = vrot.lane.b32.xlu0 %v4437_v2, %s2739_s6 }
 0x160   : > { %v1058_v36 = vpop.permute.xlu1 %1057  ;;  %v1026_v0 = vpop.permute.xlu0 %1025 }
 0x162   : > { %1071 = vrot.lane.b32.xlu1 %v4436_v41, %s2736_s8  ;;  %1039 = vrot.lane.b32.xlu0 %v4437_v2, %s2736_s8  ;;  %v4438_v41 = vld [vmem:[#allocation23_spill] sm:$0xff] }
 0x164   : > { %v3680_v56 = vpop.permute.xlu1 %1059  ;;  %v3682_v49 = vpop.permute.xlu0 %1027 }
 0x166   : > { %1197 = vrot.lane.b32.xlu1 %v3229_v38, %s2737_s9  ;;  %1165 = vrot.lane.b32.xlu0 %v3126_v10, %s2737_s9  ;;  %v187_v38 = vld [vmem:[%s2822_s30] sm:$0xff] }
 0x168   : > { %v1186_v24 = vpop.permute.xlu1 %1185  ;;  %v1154_v50 = vpop.permute.xlu0 %1153 }
 0x16a   : > { %1199 = vrot.lane.b32.xlu1 %v3226_v25, %s2737_s9  ;;  %1167 = vrot.lane.b32.xlu0 %v3123_v8, %s2737_s9  ;;  %v1506_v25 = vsel %vm1505_vm0, %v187_v38, %v4438_v41  ;;  %v4439_v8 = vld [vmem:[#allocation39_spill] sm:$0xff]  ;;  %v4441_v41 = vld [vmem:[#allocation33_spill] sm:$0xff] }
 0x16b   : > { %v1539_v2 = vsel %vm1538_vm1, %v1506_v25, %v4439_v8 }
 0x16c   : > { %v3694_v3 = vpop.permute.xlu1 %1187  ;;  %v3696_v51 = vpop.permute.xlu0 %1155  ;;  %v1572_v12 = vsel %vm1571_vm3, %v1539_v2, %v3475_v5  ;;  %v2412_v2 = vld [vmem:[%s2822_s30 + $0x7a] sm:$0xff] }
 0x16d   : > { %v1605_v38 = vsel %vm1604_vm4, %v1572_v12, %v898_v37 }
 0x16e   : > { %1325 = vrot.lane.b32.xlu1 %v2396_v6, %s2738_s21  ;;  %1293 = vrot.lane.b32.xlu0 %v2380_v58, %s2738_s21  ;;  %v1638_v25 = vsel %vm1637_vm5, %v1605_v38, %v1026_v0 }
 0x16f   : > { %v1671_v8 = vsel %vm1670_vm6, %v1638_v25, %v1154_v50  ;;  %v4443_v25 = vld [vmem:[#allocation25_spill] sm:$0xff] }
 0x170   : > { %v1314_v10 = vpop.permute.xlu1 %1313  ;;  %v1282_v15 = vpop.permute.xlu0 %1281 }
 0x171   : > { %v1704_v37 = vsel %vm1703_vm7, %v1671_v8, %v1282_v15 }
 0x172   : > { %945 = vrot.lane.b32.xlu1 %v2396_v6, %s2735_s7  ;;  %913 = vrot.lane.b32.xlu0 %v2380_v58, %s2735_s7  ;;  %v4440_v6 = vld [vmem:[#allocation29_spill] sm:$0xff] }
 0x173   : > { %v1522_v58 = vsel %vm1505_vm0, %v4441_v41, %v4440_v6 }
 0x174   : > { %v1284_v42 = vpop.permute.xlu1 %1283  ;;  %v3711_v7 = vpop.permute.xlu0 %933  ;;  %v1555_v5 = vsel %vm1538_vm1, %v1522_v58, %v3352_v19  ;;  %v188_v19 = vld [vmem:[%s2822_s30 + $0x8] sm:$0xff] }
 0x175   : > { %v1588_v12 = vsel %vm1571_vm3, %v1555_v5, %v3563_v29  ;;  %v4444_v5 = vld [vmem:[#allocation28_spill] sm:$0xff] }
 0x176   : > { %1327 = vrot.lane.b32.xlu1 %v2397_v40, %s2738_s21  ;;  %1295 = vrot.lane.b32.xlu0 %v2381_v30, %s2738_s21  ;;  %v1621_v0 = vsel %vm1604_vm4, %v1588_v12, %v930_v9  ;;  %v2334_v12 = vld [vmem:[%s2822_s30 + $0x13a] sm:$0xff] }
 0x177   : > { %v1654_v45 = vsel %vm1637_vm5, %v1621_v0, %v1058_v36  ;;  %v1507_v36 = vsel %vm1505_vm0, %v188_v19, %v4443_v25  ;;  %v2351_v25 = vld [vmem:[%s2822_s30 + $0x98] sm:$0xff] }
 0x178   : > { %v1410_v6 = vpop.permute.xlu1 %1409  ;;  %v1316_v41 = vpop.permute.xlu0 %1315  ;;  %v1687_v29 = vsel %vm1670_vm6, %v1654_v45, %v1186_v24  ;;  %v4446_v45 = vld [vmem:[#allocation38_spill] sm:$0xff] }
 0x179   : > { %v1737_v38 = vsel %vm1736_vm8, %v1704_v37, %v1410_v6  ;;  %v1720_v50 = vsel %vm1703_vm7, %v1687_v29, %v1314_v10  ;;  %v1540_v24 = vsel %vm1538_vm1, %v1507_v36, %v4446_v45  ;;  %v2413_v29 = vld [vmem:[%s2822_s30 + $0x82] sm:$0xff] }
 0x17a   : > { %1453 = vrot.lane.b32.xlu1 %v4442_v26, %s2739_s6  ;;  %1421 = vrot.lane.b32.xlu0 %v2412_v2, %s2739_s6  ;;  %v4445_v26 = vld [vmem:[#allocation32_spill] sm:$0xff]  ;;  %v1573_v37 = vsel %vm1571_vm3, %v1540_v24, %v3473_v20 }
 0x17b   : > { %2525 = vmatprep.mubr.msk.f32.mxu0 %vm1781_vm9, %v1737_v38  ;;  %v1523_v8 = vsel %vm1505_vm0, %v4445_v26, %v4444_v5  ;;  %v1606_v0 = vsel %vm1604_vm4, %v1573_v37, %v3649_v59  ;;  %v2429_v59 = vld [vmem:[%s2822_s30 + $0x142] sm:$0xff]  ;;  %v2398_v26 = vld [vmem:[%s2822_s30 + $0x151] sm:$0xff] }
 0x17c   : > { %v3737_v15 = vpop.permute.xlu1 %935  ;;  %v1442_v9 = vpop.permute.xlu0 %1441  ;;  %v1556_v10 = vsel %vm1538_vm1, %v1523_v8, %v3350_v18  ;;  %v1639_v19 = vsel %vm1637_vm5, %v1606_v0, %v3682_v49  ;;  %v2382_v8 = vld [vmem:[%s2822_s30 + $0x91] sm:$0xff]  ;;  %v4449_v37 = vld [vmem:[#allocation42_spill] sm:$0xff] }
 0x17d   : > { %v1753_v58 = vsel %vm1736_vm8, %v1720_v50, %v1442_v9  ;;  %v1589_v6 = vsel %vm1571_vm3, %v1556_v10, %v3561_v14  ;;  %v1672_v14 = vsel %vm1670_vm6, %v1639_v19, %v3696_v51  ;;  %v2350_v51 = vld [vmem:[%s2822_s30 + $0x90] sm:$0xff]  ;;  %v4447_v10 = vld [vmem:[#allocation22_spill] sm:$0xff] }
 0x17e   : > { %947 = vrot.lane.b32.xlu1 %v2397_v40, %s2735_s7  ;;  %915 = vrot.lane.b32.xlu0 %v2381_v30, %s2735_s7  ;;  %v1622_v38 = vsel %vm1604_vm4, %v1589_v6, %v3670_v34  ;;  %v1705_v34 = vsel %vm1703_vm7, %v1672_v14, %v1284_v42  ;;  %v4450_v19 = vld [vmem:[#allocation31_spill] sm:$0xff] }
 0x17f   : > { %2549 = vmatprep.mubr.msk.f32.mxu1 %vm1781_vm9, %v1753_v58  ;;  %v1655_v18 = vsel %vm1637_vm5, %v1622_v38, %v3680_v56 }
 0x180   : > { %v3757_v40 = vpop.permute.xlu1 %1061  ;;  %v1030_v30 = vpop.permute.xlu0 %1029  ;;  %v1688_v20 = vsel %vm1670_vm6, %v1655_v18, %v3694_v3 }
 0x181   : > { %v1721_v56 = vsel %vm1703_vm7, %v1688_v20, %v1316_v41  ;;  %v4451_v20 = vld [vmem:[#allocation35_spill] sm:$0xff] }
 0x182   : > { %1073 = vrot.lane.b32.xlu1 %v2334_v12, %s2736_s8  ;;  %1041 = vrot.lane.b32.xlu0 %v2412_v2, %s2736_s8  ;;  %v4448_v12 = vld [vmem:[#allocation26_spill] sm:$0xff]  ;;  %v1524_v14 = vsel %vm1505_vm0, %v4451_v20, %v4450_v19 }
 0x184   : > { %v1444_v50 = vpop.permute.xlu1 %1443  ;;  %v1412_v9 = vpop.permute.xlu0 %1411 }
 0x185   : > { %v1754_v49 = vsel %vm1736_vm8, %v1721_v56, %v1444_v50  ;;  %v1738_v2 = vsel %vm1736_vm8, %v1705_v34, %v1412_v9  ;;  %v2399_v34 = vld [vmem:[%s2822_s30 + $0x159] sm:$0xff] }
 0x186   : > { %1455 = vrot.lane.b32.xlu1 %v2429_v59, %s2739_s6  ;;  %1423 = vrot.lane.b32.xlu0 %v2413_v29, %s2739_s6  ;;  %v2383_v56 = vld [vmem:[%s2822_s30 + $0x99] sm:$0xff] }
 0x187   : > { %2526 = vmatmul.mubr.msk.f32.vlgmr.msra.gmra.mrb[0].mxu0 %vm1781_vm9, %v1738_v2  ;;  %2550 = vmatmul.mubr.msk.f32.vlgmr.msra.gmra.mrb[0].mxu1 %vm1781_vm9, %v1754_v49 }
 0x188   : > { %v3783_v42 = vpop.permute.xlu1 %1063  ;;  %v3785_v3 = vpop.permute.xlu0 %1031 }
 0x18a   : > { %1075 = vrot.lane.b32.xlu1 %v2429_v59, %s2736_s8  ;;  %1043 = vrot.lane.b32.xlu0 %v2413_v29, %s2736_s8 }
 0x18c   : > { %v1190_v41 = vpop.permute.xlu1 %1189  ;;  %v1158_v58 = vpop.permute.xlu0 %1157 }
 0x18e   : > { %1201 = vrot.lane.b32.xlu1 %v4411_v33, %s2737_s9  ;;  %1169 = vrot.lane.b32.xlu0 %v2350_v51, %s2737_s9  ;;  %v1508_v33 = vsel %vm1505_vm0, %v4448_v12, %v4447_v10  ;;  %v4453_v10 = vld [vmem:[#allocation27_spill] sm:$0xff]  ;;  %v4454_v12 = vld [vmem:[#allocation30_spill] sm:$0xff] }
 0x18f   : > { %v1541_v6 = vsel %vm1538_vm1, %v1508_v33, %v4449_v37  ;;  %v4455_v33 = vld [vmem:[#allocation34_spill] sm:$0xff] }
 0x190   : > { %v1192_v36 = vpop.permute.xlu1 %1191  ;;  %v1160_v5 = vpop.permute.xlu0 %1159  ;;  %v1525_v37 = vsel %vm1505_vm0, %v4455_v33, %v4454_v12 }
 0x192   : > { %1203 = vrot.lane.b32.xlu1 %v3243_v39, %s2737_s9  ;;  %1171 = vrot.lane.b32.xlu0 %v2351_v25, %s2737_s9  ;;  %v1574_v39 = vsel %vm1571_vm3, %v1541_v6, %v3483_v35  ;;  %v1557_v35 = vsel %vm1538_vm1, %v1524_v14, %v3360_v43  ;;  %v1558_v6 = vsel %vm1538_vm1, %v1525_v37, %v3358_v48 }
 0x193   : > { %v1607_v18 = vsel %vm1604_vm4, %v1574_v39, %v3657_v57  ;;  %v1590_v57 = vsel %vm1571_vm3, %v1557_v35, %v3571_v47  ;;  %v2430_v47 = vld [vmem:[%s2822_s30 + $0x152] sm:$0xff] }
 0x194   : > { %v1318_v45 = vpop.permute.xlu1 %1317  ;;  %v1286_v24 = vpop.permute.xlu0 %1285  ;;  %v1640_v59 = vsel %vm1637_vm5, %v1607_v18, %v1030_v30  ;;  %v1623_v49 = vsel %vm1604_vm4, %v1590_v57, %v3711_v7  ;;  %v1591_v18 = vsel %vm1571_vm3, %v1558_v6, %v3569_v52 }
 0x195   : > { %v1673_v29 = vsel %vm1670_vm6, %v1640_v59, %v1158_v58  ;;  %v1656_v43 = vsel %vm1637_vm5, %v1623_v49, %v3757_v40  ;;  %v2414_v58 = vld [vmem:[%s2822_s30 + $0x92] sm:$0xff]  ;;  %v1624_v59 = vsel %vm1604_vm4, %v1591_v18, %v3737_v15 }
 0x196   : > { %1329 = vrot.lane.b32.xlu1 %v2398_v26, %s2738_s21  ;;  %1297 = vrot.lane.b32.xlu0 %v2382_v8, %s2738_s21  ;;  %v1706_v50 = vsel %vm1703_vm7, %v1673_v29, %v1286_v24  ;;  %v1689_v51 = vsel %vm1670_vm6, %v1656_v43, %v1190_v41  ;;  %v4452_v24 = vld [vmem:[#allocation24_spill] sm:$0xff]  ;;  %v4456_v41 = vld [vmem:[#allocation41_spill] sm:$0xff]  ;;  %v1657_v35 = vsel %vm1637_vm5, %v1624_v59, %v3783_v42  ;;  %v2353_v43 = vld [vmem:[%s2822_s30 + $0xb0] sm:$0xff] }
 0x197   : > { %v1722_v25 = vsel %vm1703_vm7, %v1689_v51, %v1318_v45  ;;  %v1509_v40 = vsel %vm1505_vm0, %v4453_v10, %v4452_v24  ;;  %v1609_v10 = vsel %vm1604_vm4, %v3495_v62, %v3664_v55  ;;  %v2385_v62 = vld [vmem:[%s2822_s30 + $0xb1] sm:$0xff] }
 0x198   : > { %v1288_v0 = vpop.permute.xlu1 %1287  ;;  %v3808_v38 = vpop.permute.xlu0 %937  ;;  %v1542_v45 = vsel %vm1538_vm1, %v1509_v40, %v4456_v41 }
 0x199   : > { %v1575_v39 = vsel %vm1571_vm3, %v1542_v45, %v3481_v16  ;;  %v1690_v16 = vsel %vm1670_vm6, %v1657_v35, %v1192_v36  ;;  %v2431_v36 = vld [vmem:[%s2822_s30 + $0x15a] sm:$0xff]  ;;  %v1625_v40 = vsel %vm1604_vm4, %v3583_v1, %v3808_v38  ;;  %v2401_v45 = vld [vmem:[%s2822_s30 + $0x171] sm:$0xff] }
 0x19a   : > { %949 = vrot.lane.b32.xlu1 %v2398_v26, %s2735_s7  ;;  %917 = vrot.lane.b32.xlu0 %v2382_v8, %s2735_s7  ;;  %v1608_v14 = vsel %vm1604_vm4, %v1575_v39, %v3655_v17 }
 0x19b   : > { %v1641_v48 = vsel %vm1637_vm5, %v1608_v14, %v3785_v3 }
 0x19c   : > { %v1414_v9 = vpop.permute.xlu1 %1413  ;;  %v1320_v30 = vpop.permute.xlu0 %1319  ;;  %v1674_v52 = vsel %vm1670_vm6, %v1641_v48, %v1160_v5  ;;  %v2415_v5 = vld [vmem:[%s2822_s30 + $0x9a] sm:$0xff] }
 0x19d   : > { %v1739_v2 = vsel %vm1736_vm8, %v1706_v50, %v1414_v9  ;;  %v1707_v17 = vsel %vm1703_vm7, %v1674_v52, %v1288_v0  ;;  %v1723_v15 = vsel %vm1703_vm7, %v1690_v16, %v1320_v30  ;;  %v2352_v9 = vld [vmem:[%s2822_s30 + $0xa8] sm:$0xff]  ;;  %v1610_v16 = vsel %vm1604_vm4, %v3491_v4, %v3662_v11 }
 0x19e   : > { %1331 = vrot.lane.b32.xlu1 %v2399_v34, %s2738_s21  ;;  %1299 = vrot.lane.b32.xlu0 %v2383_v56, %s2738_s21 }
 0x19f   : > { %2528 = vmatprep.mubr.msk.f32.mxu0 %vm1781_vm9, %v1739_v2  ;;  %v2369_v2 = vld [vmem:[%s2822_s30 + $0x170] sm:$0xff] }
 0x1a0   : > { %v3838_v26 = vpop.permute.xlu1 %939  ;;  %v1446_v7 = vpop.permute.xlu0 %1445 }
 0x1a1   : > { %v1755_v8 = vsel %vm1736_vm8, %v1722_v25, %v1446_v7  ;;  %v2384_v25 = vld [vmem:[%s2822_s30 + $0xa9] sm:$0xff]  ;;  %v1626_v52 = vsel %vm1604_vm4, %v3579_v60, %v3838_v26 }
 0x1a2   : > { %1457 = vrot.lane.b32.xlu1 %v2430_v47, %s2739_s6  ;;  %1425 = vrot.lane.b32.xlu0 %v2414_v58, %s2739_s6 }
 0x1a3   : > { %2552 = vmatprep.mubr.msk.f32.mxu1 %vm1781_vm9, %v1755_v8 }
 0x1a4   : > { %v1066_v19 = vpop.permute.xlu1 %1065  ;;  %v1034_v20 = vpop.permute.xlu0 %1033 }
 0x1a5   : > { %v1658_v12 = vsel %vm1637_vm5, %v1625_v40, %v1066_v19  ;;  %v1642_v33 = vsel %vm1637_vm5, %v1609_v10, %v1034_v20  ;;  %v2432_v19 = vld [vmem:[%s2822_s30 + $0x16a] sm:$0xff] }
 0x1a6   : > { %951 = vrot.lane.b32.xlu1 %v2399_v34, %s2735_s7  ;;  %919 = vrot.lane.b32.xlu0 %v2383_v56, %s2735_s7  ;;  %v2416_v20 = vld [vmem:[%s2822_s30 + $0xaa] sm:$0xff] }
 0x1a8   : > { %v1448_v29 = vpop.permute.xlu1 %1447  ;;  %v1416_v57 = vpop.permute.xlu0 %1415 }
 0x1a9   : > { %v1756_v42 = vsel %vm1736_vm8, %v1723_v15, %v1448_v29  ;;  %v1740_v3 = vsel %vm1736_vm8, %v1707_v17, %v1416_v57 }
 0x1aa   : > { %1077 = vrot.lane.b32.xlu1 %v2430_v47, %s2736_s8  ;;  %1045 = vrot.lane.b32.xlu0 %v2414_v58, %s2736_s8  ;;  %v2400_v58 = vld [vmem:[%s2822_s30 + $0x169] sm:$0xff] }
 0x1ab   : > { %2529 = vmatmul.mubr.msk.f32.gmra.mrb[2].mxu0 %vm1781_vm9, %v1740_v3  ;;  %2553 = vmatmul.mubr.msk.f32.gmra.mrb[2].mxu1 %vm1781_vm9, %v1756_v42 }
 0x1ac   : > { %v1068_v0 = vpop.permute.xlu1 %1067  ;;  %v1036_v34 = vpop.permute.xlu0 %1035 }
 0x1ad   : > { %v1659_v17 = vsel %vm1637_vm5, %v1626_v52, %v1068_v0  ;;  %v1643_v15 = vsel %vm1637_vm5, %v1610_v16, %v1036_v34 }
 0x1ae   : > { %1459 = vrot.lane.b32.xlu1 %v2431_v36, %s2739_s6  ;;  %1427 = vrot.lane.b32.xlu0 %v2415_v5, %s2739_s6 }
 0x1b0   : > { %v1194_v56 = vpop.permute.xlu1 %1193  ;;  %v1162_v50 = vpop.permute.xlu0 %1161 }
 0x1b1   : > { %v1691_v37 = vsel %vm1670_vm6, %v1658_v12, %v1194_v56  ;;  %v1675_v41 = vsel %vm1670_vm6, %v1642_v33, %v1162_v50 }
 0x1b2   : > { %1079 = vrot.lane.b32.xlu1 %v2431_v36, %s2736_s8  ;;  %1047 = vrot.lane.b32.xlu0 %v2415_v5, %s2736_s8  ;;  %v2433_v36 = vld [vmem:[%s2822_s30 + $0x172] sm:$0xff] }
 0x1b3   : > { %v2417_v5 = vld [vmem:[%s2822_s30 + $0xb2] sm:$0xff] }
 0x1b4   : > { %v1196_v30 = vpop.permute.xlu1 %1195  ;;  %v1164_v49 = vpop.permute.xlu0 %1163 }
 0x1b5   : > { %v1692_v29 = vsel %vm1670_vm6, %v1659_v17, %v1196_v30  ;;  %v1676_v57 = vsel %vm1670_vm6, %v1643_v15, %v1164_v49  ;;  %v2354_v30 = vld [vmem:[%s2822_s30 + $0xc0] sm:$0xff] }
 0x1b6   : > { %1205 = vrot.lane.b32.xlu1 %v4414_v61, %s2737_s9  ;;  %1173 = vrot.lane.b32.xlu0 %v2352_v9, %s2737_s9  ;;  %v2370_v9 = vld [vmem:[%s2822_s30 + $0x180] sm:$0xff] }
 0x1b8   : > { %v1322_v51 = vpop.permute.xlu1 %1321  ;;  %v1290_v47 = vpop.permute.xlu0 %1289 }
 0x1b9   : > { %v1724_v55 = vsel %vm1703_vm7, %v1691_v37, %v1322_v51  ;;  %v1708_v1 = vsel %vm1703_vm7, %v1675_v41, %v1290_v47  ;;  %v2355_v51 = vld [vmem:[%s2822_s30 + $0xc8] sm:$0xff] }
 0x1ba   : > { %1207 = vrot.lane.b32.xlu1 %v2369_v2, %s2737_s9  ;;  %1175 = vrot.lane.b32.xlu0 %v2353_v43, %s2737_s9  ;;  %v2371_v43 = vld [vmem:[%s2822_s30 + $0x188] sm:$0xff] }
 0x1bc   : > { %v3894_v7 = vpop.permute.xlu1 %941  ;;  %v3896_v8 = vpop.permute.xlu0 %909 }
 0x1bd   : > { %v1627_v33 = vsel %vm1604_vm4, %v3595_v44, %v3894_v7  ;;  %v1611_v37 = vsel %vm1604_vm4, %v3507_v53, %v3896_v8  ;;  %v2387_v44 = vld [vmem:[%s2822_s30 + $0xc9] sm:$0xff] }
 0x1be   : > { %1333 = vrot.lane.b32.xlu1 %v2400_v58, %s2738_s21  ;;  %1301 = vrot.lane.b32.xlu0 %v2384_v25, %s2738_s21 }
 0x1c0   : > { %v1324_v61 = vpop.permute.xlu1 %1323  ;;  %v1292_v24 = vpop.permute.xlu0 %1291 }
 0x1c1   : > { %v1725_v4 = vsel %vm1703_vm7, %v1692_v29, %v1324_v61  ;;  %v1709_v11 = vsel %vm1703_vm7, %v1676_v57, %v1292_v24  ;;  %v2386_v61 = vld [vmem:[%s2822_s30 + $0xc1] sm:$0xff] }
 0x1c2   : > { %953 = vrot.lane.b32.xlu1 %v2400_v58, %s2735_s7  ;;  %921 = vrot.lane.b32.xlu0 %v2384_v25, %s2735_s7  ;;  %v2402_v25 = vld [vmem:[%s2822_s30 + $0x181] sm:$0xff] }
 0x1c4   : > { %v1450_v38 = vpop.permute.xlu1 %1449  ;;  %v1418_v6 = vpop.permute.xlu0 %1417 }
 0x1c5   : > { %v1757_v39 = vsel %vm1736_vm8, %v1724_v55, %v1450_v38  ;;  %v1741_v18 = vsel %vm1736_vm8, %v1708_v1, %v1418_v6  ;;  %v2403_v1 = vld [vmem:[%s2822_s30 + $0x189] sm:$0xff] }
 0x1c6   : > { %1335 = vrot.lane.b32.xlu1 %v2401_v45, %s2738_s21  ;;  %1303 = vrot.lane.b32.xlu0 %v2385_v62, %s2738_s21 }
 0x1c7   : > { %2531 = vmatprep.mubr.msk.f32.mxu0 %vm1781_vm9, %v1741_v18  ;;  %2555 = vmatprep.mubr.msk.f32.mxu1 %vm1781_vm9, %v1757_v39  ;;  %v2434_v18 = vld [vmem:[%s2822_s30 + $0x182] sm:$0xff] }
 0x1c8   : > { %v3924_v14 = vpop.permute.xlu1 %943  ;;  %v3926_v59 = vpop.permute.xlu0 %911 }
 0x1c9   : > { %v1628_v52 = vsel %vm1604_vm4, %v3591_v63, %v3924_v14  ;;  %v1612_v17 = vsel %vm1604_vm4, %v3503_v28, %v3926_v59 }
 0x1ca   : > { %1461 = vrot.lane.b32.xlu1 %v2432_v19, %s2739_s6  ;;  %1429 = vrot.lane.b32.xlu0 %v2416_v20, %s2739_s6 }
 0x1cc   : > { %v1070_v35 = vpop.permute.xlu1 %1069  ;;  %v1038_v48 = vpop.permute.xlu0 %1037 }
 0x1cd   : > { %v1660_v41 = vsel %vm1637_vm5, %v1627_v33, %v1070_v35 }
 0x1ce   : > { %955 = vrot.lane.b32.xlu1 %v2401_v45, %s2735_s7  ;;  %923 = vrot.lane.b32.xlu0 %v2385_v62, %s2735_s7  ;;  %v1644_v45 = vsel %vm1637_vm5, %v1611_v37, %v1038_v48 }
 0x1d0   : > { %v1452_v42 = vpop.permute.xlu1 %1451  ;;  %v1420_v60 = vpop.permute.xlu0 %1419 }
 0x1d1   : > { %v1758_v26 = vsel %vm1736_vm8, %v1725_v4, %v1452_v42  ;;  %v1742_v3 = vsel %vm1736_vm8, %v1709_v11, %v1420_v60  ;;  %v2435_v60 = vld [vmem:[%s2822_s30 + $0x18a] sm:$0xff] }
 0x1d2   : > { %1081 = vrot.lane.b32.xlu1 %v2432_v19, %s2736_s8  ;;  %1049 = vrot.lane.b32.xlu0 %v2416_v20, %s2736_s8  ;;  %v2418_v19 = vld [vmem:[%s2822_s30 + $0xc2] sm:$0xff] }
 0x1d3   : > { %2532 = vmatmul.mubr.msk.f32.gmra.mrb[4].mxu0 %vm1781_vm9, %v1742_v3  ;;  %2556 = vmatmul.mubr.msk.f32.gmra.mrb[4].mxu1 %vm1781_vm9, %v1758_v26  ;;  %v2419_v26 = vld [vmem:[%s2822_s30 + $0xca] sm:$0xff] }
 0x1d4   : > { %v1072_v0 = vpop.permute.xlu1 %1071  ;;  %v1040_v34 = vpop.permute.xlu0 %1039 }
 0x1d5   : > { %v1661_v15 = vsel %vm1637_vm5, %v1628_v52, %v1072_v0  ;;  %v1645_v29 = vsel %vm1637_vm5, %v1612_v17, %v1040_v34  ;;  %v2372_v34 = vld [vmem:[%s2822_s30 + $0x198] sm:$0xff] }
 0x1d6   : > { %1463 = vrot.lane.b32.xlu1 %v2433_v36, %s2739_s6  ;;  %1431 = vrot.lane.b32.xlu0 %v2417_v5, %s2739_s6 }
 0x1d8   : > { %v1198_v56 = vpop.permute.xlu1 %1197  ;;  %v1166_v50 = vpop.permute.xlu0 %1165 }
 0x1d9   : > { %v1693_v62 = vsel %vm1670_vm6, %v1660_v41, %v1198_v56  ;;  %v1677_v55 = vsel %vm1670_vm6, %v1644_v45, %v1166_v50  ;;  %v2356_v56 = vld [vmem:[%s2822_s30 + $0xd8] sm:$0xff] }
 0x1da   : > { %1083 = vrot.lane.b32.xlu1 %v2433_v36, %s2736_s8  ;;  %1051 = vrot.lane.b32.xlu0 %v2417_v5, %s2736_s8 }
 0x1dc   : > { %v1200_v49 = vpop.permute.xlu1 %1199  ;;  %v1168_v2 = vpop.permute.xlu0 %1167 }
 0x1dd   : > { %v1694_v57 = vsel %vm1670_vm6, %v1661_v15, %v1200_v49  ;;  %v1678_v4 = vsel %vm1670_vm6, %v1645_v29, %v1168_v2  ;;  %v2357_v49 = vld [vmem:[%s2822_s30 + $0xe0] sm:$0xff] }
 0x1de   : > { %1209 = vrot.lane.b32.xlu1 %v2370_v9, %s2737_s9  ;;  %1177 = vrot.lane.b32.xlu0 %v2354_v30, %s2737_s9  ;;  %v2373_v30 = vld [vmem:[%s2822_s30 + $0x1a0] sm:$0xff] }
 0x1e0   : > { %v1326_v47 = vpop.permute.xlu1 %1325  ;;  %v1294_v58 = vpop.permute.xlu0 %1293 }
 0x1e1   : > { %v1726_v7 = vsel %vm1703_vm7, %v1693_v62, %v1326_v47  ;;  %v1710_v53 = vsel %vm1703_vm7, %v1677_v55, %v1294_v58  ;;  %v2388_v47 = vld [vmem:[%s2822_s30 + $0xd9] sm:$0xff] }
 0x1e2   : > { %1211 = vrot.lane.b32.xlu1 %v2371_v43, %s2737_s9  ;;  %1179 = vrot.lane.b32.xlu0 %v2355_v51, %s2737_s9  ;;  %v2404_v51 = vld [vmem:[%s2822_s30 + $0x199] sm:$0xff] }
 0x1e4   : > { %v3966_v24 = vpop.permute.xlu1 %945  ;;  %v3968_v10 = vpop.permute.xlu0 %913 }
 0x1e5   : > { %v1629_v37 = vsel %vm1604_vm4, %v3607_v27, %v3966_v24  ;;  %v1613_v41 = vsel %vm1604_vm4, %v3519_v54, %v3968_v10  ;;  %v2420_v27 = vld [vmem:[%s2822_s30 + $0xda] sm:$0xff] }
 0x1e6   : > { %1337 = vrot.lane.b32.xlu1 %v2402_v25, %s2738_s21  ;;  %1305 = vrot.lane.b32.xlu0 %v2386_v61, %s2738_s21 }
 0x1e8   : > { %v1328_v40 = vpop.permute.xlu1 %1327  ;;  %v1296_v12 = vpop.permute.xlu0 %1295 }
 0x1e9   : > { %v1727_v63 = vsel %vm1703_vm7, %v1694_v57, %v1328_v40  ;;  %v1711_v14 = vsel %vm1703_vm7, %v1678_v4, %v1296_v12  ;;  %v2389_v40 = vld [vmem:[%s2822_s30 + $0xe1] sm:$0xff] }
 0x1ea   : > { %957 = vrot.lane.b32.xlu1 %v2402_v25, %s2735_s7  ;;  %925 = vrot.lane.b32.xlu0 %v2386_v61, %s2735_s7  ;;  %v2405_v61 = vld [vmem:[%s2822_s30 + $0x1a1] sm:$0xff] }
 0x1ec   : > { %v1454_v8 = vpop.permute.xlu1 %1453  ;;  %v1422_v38 = vpop.permute.xlu0 %1421 }
 0x1ed   : > { %v1759_v6 = vsel %vm1736_vm8, %v1726_v7, %v1454_v8  ;;  %v1743_v39 = vsel %vm1736_vm8, %v1710_v53, %v1422_v38  ;;  %v2437_v38 = vld [vmem:[%s2822_s30 + $0x1a2] sm:$0xff] }
 0x1ee   : > { %1339 = vrot.lane.b32.xlu1 %v2403_v1, %s2738_s21  ;;  %1307 = vrot.lane.b32.xlu0 %v2387_v44, %s2738_s21 }
 0x1ef   : > { %2534 = vmatprep.mubr.msk.f32.mxu0 %vm1781_vm9, %v1743_v39  ;;  %2558 = vmatprep.mubr.msk.f32.mxu1 %vm1781_vm9, %v1759_v6  ;;  %v2421_v6 = vld [vmem:[%s2822_s30 + $0xe2] sm:$0xff] }
 0x1f0   : > { %v3996_v20 = vpop.permute.xlu1 %947  ;;  %v3998_v35 = vpop.permute.xlu0 %915 }
 0x1f1   : > { %v1614_v52 = vsel %vm1604_vm4, %v3515_v32, %v3998_v35 }
 0x1f2   : > { %1465 = vrot.lane.b32.xlu1 %v2434_v18, %s2739_s6  ;;  %1433 = vrot.lane.b32.xlu0 %v2418_v19, %s2739_s6 }
 0x1f4   : > { %v1074_v48 = vpop.permute.xlu1 %1073  ;;  %v1042_v16 = vpop.permute.xlu0 %1041 }
 0x1f5   : > { %v1662_v45 = vsel %vm1637_vm5, %v1629_v37, %v1074_v48  ;;  %v1646_v62 = vsel %vm1637_vm5, %v1613_v41, %v1042_v16  ;;  %v1630_v16 = vsel %vm1604_vm4, %v3603_v13, %v3996_v20 }
 0x1f6   : > { %959 = vrot.lane.b32.xlu1 %v2403_v1, %s2735_s7  ;;  %927 = vrot.lane.b32.xlu0 %v2387_v44, %s2735_s7  ;;  %v2436_v44 = vld [vmem:[%s2822_s30 + $0x19a] sm:$0xff]  ;;  %s175_s30 = sand.u32 1, %s2714_s13  }
 0x1f7   : > { %s2244_s7 = sshll.u32 %s175_s30, 8  ;;  %s4277_s15 = scalar_lea.sflag [#allocation3], %s175_s30 }
 0x1f8   : > { %v1456_v11 = vpop.permute.xlu1 %1455  ;;  %v1424_v28 = vpop.permute.xlu0 %1423  ;;  %s4142_s10 = scalar_lea.vmem [#allocation2], %s2244_s7 }
 0x1f9   : > { %v1760_v59 = vsel %vm1736_vm8, %v1727_v63, %v1456_v11  ;;  %v1744_v42 = vsel %vm1736_vm8, %v1711_v14, %v1424_v28  ;;  %s2156_s18 = sshll.u32 %s4142_s10, 4  ;;  %s4269_s18 = int_to_ptr.vmem [resolvable:$true] %s2156_s18 }
 0x1fa   : > { %1085 = vrot.lane.b32.xlu1 %v2434_v18, %s2736_s8  ;;  %1053 = vrot.lane.b32.xlu0 %v2418_v19, %s2736_s8  ;;  %s2652_s26 = scalar_lea.vmem %s4269_s18, 4096  ;;  %p2659_p1 = scmp.lt.s32.totalorder %s4269_s18, %s2657_s28 }
 0x1fb   : > { %2535 = vmatmul.mubr.msk.f32.gmra.mrb[6].mxu0 %vm1781_vm9, %v1744_v42  ;;  %2559 = vmatmul.mubr.msk.f32.gmra.mrb[6].mxu1 %vm1781_vm9, %v1760_v59  ;;  %p2653_p12 = scmp.ne.s32.totalorder %s4269_s18, %s2652_s26  ;;  %p2660_p2 = scmp.lt.s32.totalorder %s2658_s29, %s2652_s26 }
 0x1fc   : > { %v1076_v3 = vpop.permute.xlu1 %1075  ;;  %v1044_v36 = vpop.permute.xlu0 %1043 }
 0x1fd   : > { %v1663_v17 = vsel %vm1637_vm5, %v1630_v16, %v1076_v3  ;;  %v1647_v15 = vsel %vm1637_vm5, %v1614_v52, %v1044_v36  ;;  %p2654_p13 = pnand %p2653_p12, %p2802_p4  ;;  %p2661_p3 = por %p2660_p2, %p2659_p1 }
 0x1fe   : > { %1467 = vrot.lane.b32.xlu1 %v2435_v60, %s2739_s6  ;;  %1435 = vrot.lane.b32.xlu0 %v2419_v26, %s2739_s6 }
 0x1ff   : > { %p2655_p0 = pneg %p2654_p13 }
 0x200   : > { %v1202_v5 = vpop.permute.xlu1 %1201  ;;  %v1170_v0 = vpop.permute.xlu0 %1169 }
 0x201   : > { %v1695_v55 = vsel %vm1670_vm6, %v1662_v45, %v1202_v5  ;;  %v1679_v1 = vsel %vm1670_vm6, %v1646_v62, %v1170_v0  ;;  %p2662_p5 = pnand %p2661_p3, %p2655_p0 }
 0x202   : > { %1087 = vrot.lane.b32.xlu1 %v2435_v60, %s2736_s8  ;;  %1055 = vrot.lane.b32.xlu0 %v2419_v26, %s2736_s8 }
 0x204   : > { %v1204_v50 = vpop.permute.xlu1 %1203  ;;  %v1172_v9 = vpop.permute.xlu0 %1171 }
 0x205   : > { %v1696_v29 = vsel %vm1670_vm6, %v1663_v17, %v1204_v50  ;;  %v1680_v57 = vsel %vm1670_vm6, %v1647_v15, %v1172_v9 }
 0x206   : > { %1213 = vrot.lane.b32.xlu1 %v2372_v34, %s2737_s9  ;;  %1181 = vrot.lane.b32.xlu0 %v2356_v56, %s2737_s9 }
 0x208   : > { %v1330_v2 = vpop.permute.xlu1 %1329  ;;  %v1298_v43 = vpop.permute.xlu0 %1297 }
 0x209   : > { %v1728_v24 = vsel %vm1703_vm7, %v1695_v55, %v1330_v2  ;;  %v1712_v54 = vsel %vm1703_vm7, %v1679_v1, %v1298_v43 }
 0x20a   : > { %1215 = vrot.lane.b32.xlu1 %v2373_v30, %s2737_s9  ;;  %1183 = vrot.lane.b32.xlu0 %v2357_v49, %s2737_s9 }
 0x20c   : > { %v4038_v58 = vpop.permute.xlu1 %949  ;;  %v4040_v25 = vpop.permute.xlu0 %917 }
 0x20d   : > { %v1631_v56 = vsel %vm1604_vm4, %v3619_v22, %v4038_v58  ;;  %v1615_v50 = vsel %vm1604_vm4, %v3531_v23, %v4040_v25 }
 0x20e   : > { %1341 = vrot.lane.b32.xlu1 %v2404_v51, %s2738_s21  ;;  %1309 = vrot.lane.b32.xlu0 %v2388_v47, %s2738_s21 }
 0x210   : > { %v1332_v12 = vpop.permute.xlu1 %1331  ;;  %v1300_v33 = vpop.permute.xlu0 %1299 }
 0x211   : > { %v1729_v4 = vsel %vm1703_vm7, %v1696_v29, %v1332_v12  ;;  %v1713_v63 = vsel %vm1703_vm7, %v1680_v57, %v1300_v33 }
 0x212   : > { %1343 = vrot.lane.b32.xlu1 %v2405_v61, %s2738_s21  ;;  %1311 = vrot.lane.b32.xlu0 %v2389_v40, %s2738_s21 }
 0x214   : > { %v1458_v10 = vpop.permute.xlu1 %1457  ;;  %v1426_v7 = vpop.permute.xlu0 %1425 }
 0x215   : > { %v1761_v53 = vsel %vm1736_vm8, %v1728_v24, %v1458_v10  ;;  %v1745_v8 = vsel %vm1736_vm8, %v1712_v54, %v1426_v7 }
 0x216   : > { %1469 = vrot.lane.b32.xlu1 %v2436_v44, %s2739_s6  ;;  %1437 = vrot.lane.b32.xlu0 %v2420_v27, %s2739_s6 }
 0x217   : > { %2537 = vmatprep.mubr.msk.f32.mxu0 %vm1781_vm9, %v1745_v8  ;;  %2561 = vmatprep.mubr.msk.f32.mxu1 %vm1781_vm9, %v1761_v53 }
 0x218   : > { %v952_v39 = vpop.permute.xlu1 %951  ;;  %v920_v18 = vpop.permute.xlu0 %919 }
 0x219   : > { %v1632_v33 = vsel %vm1604_vm4, %v3615_v46, %v952_v39  ;;  %v1616_v37 = vsel %vm1604_vm4, %v3527_v31, %v920_v18  ;;  %v4132_v18 = vld [vmem:[%s4326_s2] ss:$0 sm:$0xff] }
 0x21a   : > { %1471 = vrot.lane.b32.xlu1 %v2437_v38, %s2739_s6  ;;  %1439 = vrot.lane.b32.xlu0 %v2421_v6, %s2739_s6 }
 0x21c   : > { %v1078_v19 = vpop.permute.xlu1 %1077  ;;  %v1046_v48 = vpop.permute.xlu0 %1045 }
 0x21d   : > { %v1664_v9 = vsel %vm1637_vm5, %v1631_v56, %v1078_v19  ;;  %v1648_v30 = vsel %vm1637_vm5, %v1615_v50, %v1046_v48 }
 0x220   : > { %v1460_v14 = vpop.permute.xlu1 %1459  ;;  %v1428_v11 = vpop.permute.xlu0 %1427 }
 0x221   : > { %v1762_v13 = vsel %vm1736_vm8, %v1729_v4, %v1460_v14  ;;  %v1746_v20 = vsel %vm1736_vm8, %v1713_v63, %v1428_v11 }
 0x222   : > { %2538 = vmatmul.mubr.msk.f32.gmra.mrb[8].mxu0 %vm1781_vm9, %v1746_v20  ;;  %2562 = vmatmul.mubr.msk.f32.gmra.mrb[8].mxu1 %vm1781_vm9, %v1762_v13  ;;  %v4457_v20 = vld [vmem:[#allocation16_spill] sm:$0xff] }
 0x224   : > { %v1080_v32 = vpop.permute.xlu1 %1079  ;;  %v1048_v35 = vpop.permute.xlu0 %1047 }
 0x225   : > { %v1665_v41 = vsel %vm1637_vm5, %v1632_v33, %v1080_v32  ;;  %v1649_v45 = vsel %vm1637_vm5, %v1616_v37, %v1048_v35 }
 0x228   : > { %v1206_v28 = vpop.permute.xlu1 %1205  ;;  %v1174_v59 = vpop.permute.xlu0 %1173 }
 0x229   : > { %v1697_v49 = vsel %vm1670_vm6, %v1664_v9, %v1206_v28  ;;  %v1681_v2 = vsel %vm1670_vm6, %v1648_v30, %v1174_v59  ;;  %v4458_v9 = vld [vmem:[#allocation37_spill] sm:$0xff] }
 0x22c   : > { %v1208_v42 = vpop.permute.xlu1 %1207  ;;  %v1176_v60 = vpop.permute.xlu0 %1175 }
 0x22d   : > { %v1698_v62 = vsel %vm1670_vm6, %v1665_v41, %v1208_v42  ;;  %v1682_v55 = vsel %vm1670_vm6, %v1649_v45, %v1176_v60 }
 0x230   : > { %v1334_v26 = vpop.permute.xlu1 %1333  ;;  %v1302_v3 = vpop.permute.xlu0 %1301 }
 0x231   : > { %v1730_v43 = vsel %vm1703_vm7, %v1697_v49, %v1334_v26  ;;  %v1714_v51 = vsel %vm1703_vm7, %v1681_v2, %v1302_v3  ;;  %v4459_v49 = vld [vmem:[#allocation40_spill] sm:$0xff] }
 0x234   : > { %v4088_v36 = vpop.permute.xlu1 %953  ;;  %v4090_v5 = vpop.permute.xlu0 %921 }
 0x235   : > { %v1633_v13 = vsel %vm1604_vm4, %v3632_v21, %v4088_v36  ;;  %v1617_v32 = vsel %vm1604_vm4, %v4457_v20, %v4090_v5  ;;  %v4463_v20 = vld [vmem:[#allocation36_spill] sm:$0xff] }
 0x238   : > { %v1336_v0 = vpop.permute.xlu1 %1335  ;;  %v1304_v34 = vpop.permute.xlu0 %1303 }
 0x239   : > { %v1731_v1 = vsel %vm1703_vm7, %v1698_v62, %v1336_v0  ;;  %v1715_v44 = vsel %vm1703_vm7, %v1682_v55, %v1304_v34 }
 0x23c   : > { %v1462_v47 = vpop.permute.xlu1 %1461  ;;  %v1430_v61 = vpop.permute.xlu0 %1429 }
 0x23d   : > { %v1763_v22 = vsel %vm1736_vm8, %v1730_v43, %v1462_v47  ;;  %v1747_v58 = vsel %vm1736_vm8, %v1714_v51, %v1430_v61 }
 0x23e   : > { %2540 = vmatprep.mubr.msk.f32.mxu0 %vm1781_vm9, %v1747_v58  ;;  %2564 = vmatprep.mubr.msk.f32.mxu1 %vm1781_vm9, %v1763_v22 }
 0x240   : > { %v4108_v23 = vpop.permute.xlu1 %955  ;;  %v4110_v25 = vpop.permute.xlu0 %923 }
 0x241   : > { %v1634_v30 = vsel %vm1604_vm4, %v4458_v9, %v4108_v23  ;;  %v1618_v2 = vsel %vm1604_vm4, %v4459_v49, %v4110_v25 }
 0x244   : > { %v1082_v40 = vpop.permute.xlu1 %1081  ;;  %v1050_v12 = vpop.permute.xlu0 %1049 }
 0x245   : > { %v1666_v35 = vsel %vm1637_vm5, %v1633_v13, %v1082_v40  ;;  %v1650_v28 = vsel %vm1637_vm5, %v1617_v32, %v1050_v12  ;;  %v4462_v13 = vld [vmem:[#allocation15_spill] sm:$0xff] }
 0x248   : > { %v1464_v27 = vpop.permute.xlu1 %1463  ;;  %v1432_v24 = vpop.permute.xlu0 %1431 }
 0x249   : > { %v1764_v46 = vsel %vm1736_vm8, %v1731_v1, %v1464_v27  ;;  %v1748_v31 = vsel %vm1736_vm8, %v1715_v44, %v1432_v24 }
 0x24a   : > { %2541 = vmatmul.mubr.msk.f32.gmra.mrb[10].mxu0 %vm1781_vm9, %v1748_v31  ;;  %2565 = vmatmul.mubr.msk.f32.gmra.mrb[10].mxu1 %vm1781_vm9, %v1764_v46 }
 0x24c   : > { %v1084_v54 = vpop.permute.xlu1 %1083  ;;  %v1052_v10 = vpop.permute.xlu0 %1051 }
 0x24d   : > { %v1667_v43 = vsel %vm1637_vm5, %v1634_v30, %v1084_v54  ;;  %v1651_v51 = vsel %vm1637_vm5, %v1618_v2, %v1052_v10 }
 0x250   : > { %v1210_v7 = vpop.permute.xlu1 %1209  ;;  %v1178_v53 = vpop.permute.xlu0 %1177 }
 0x251   : > { %v1699_v59 = vsel %vm1670_vm6, %v1666_v35, %v1210_v7  ;;  %v1683_v42 = vsel %vm1670_vm6, %v1650_v28, %v1178_v53 }
 0x254   : > { %v1212_v8 = vpop.permute.xlu1 %1211  ;;  %v1180_v38 = vpop.permute.xlu0 %1179 }
 0x255   : > { %v1700_v47 = vsel %vm1670_vm6, %v1667_v43, %v1212_v8  ;;  %v1684_v61 = vsel %vm1670_vm6, %v1651_v51, %v1180_v38 }
 0x258   : > { %v1338_v6 = vpop.permute.xlu1 %1337  ;;  %v1306_v39 = vpop.permute.xlu0 %1305 }
 0x259   : > { %v1732_v60 = vsel %vm1703_vm7, %v1699_v59, %v1338_v6  ;;  %v1716_v26 = vsel %vm1703_vm7, %v1683_v42, %v1306_v39  ;;  %v4460_v6 = vld [vmem:[#allocation10_spill] sm:$0xff] }
 0x25a   : > { %v2527_v19 = vpop.f32.mrb[0].mxu0  ;;  %v2551_v48 = vpop.f32.mrb[0].mxu1 }
 0x25b   : > { %v1954_v16 = vadd.f32 %v2527_v19, %v4132_v18  ;;  %v2034_v52 = vadd.f32 %v2551_v48, %v4132_v18  ;;  %v1948_v17 = vpop.f32.mrb[1].mxu0  ;;  %v2028_v15 = vpop.f32.mrb[1].mxu1  ;;  %v4461_v19 = vld [vmem:[#allocation43_spill] sm:$0xff] }
 0x25c   : > { %v1949_v29 = vadd.f32 %v4132_v18, %v1948_v17  ;;  %v2029_v57 = vadd.f32 %v4132_v18, %v2028_v15  ;;  %v4138_v4 = vpop.permute.xlu1 %957  ;;  %v4140_v63 = vpop.permute.xlu0 %925 }
 0x25d   : > { %2108 = vst [vmem:[%s4142_s10 + $0x8] sm:$0xff] %v1954_v16  ;;  %2124 = vst [vmem:[%s4142_s10 + $0x88] sm:$0xff] %v2034_v52  ;;  %v1635_v39 = vsel %vm1604_vm4, %v4460_v6, %v4138_v4  ;;  %v1619_v48 = vsel %vm1604_vm4, %v4461_v19, %v4140_v63 }
 0x25e   : > { %2107 = vst [vmem:[%s4142_s10] sm:$0xff] %v1949_v29  ;;  %2123 = vst [vmem:[%s4142_s10 + $0x80] sm:$0xff] %v2029_v57 }
 0x260   : > { %v1340_v14 = vpop.permute.xlu1 %1339  ;;  %v1308_v11 = vpop.permute.xlu0 %1307 }
 0x261   : > { %v1733_v22 = vsel %vm1703_vm7, %v1700_v47, %v1340_v14  ;;  %v1717_v58 = vsel %vm1703_vm7, %v1684_v61, %v1308_v11 }
 0x264   : > { %v1466_v3 = vpop.permute.xlu1 %1465  ;;  %v1434_v0 = vpop.permute.xlu0 %1433 }
 0x265   : > { %v1765_v21 = vsel %vm1736_vm8, %v1732_v60, %v1466_v3  ;;  %v1749_v36 = vsel %vm1736_vm8, %v1716_v26, %v1434_v0 }
 0x266   : > { %2543 = vmatprep.mubr.msk.f32.mxu0 %vm1781_vm9, %v1749_v36  ;;  %2567 = vmatprep.mubr.msk.f32.mxu1 %vm1781_vm9, %v1765_v21 }
 0x268   : > { %v960_v5 = vpop.permute.xlu1 %959  ;;  %v928_v34 = vpop.permute.xlu0 %927 }
 0x269   : > { %v1636_v4 = vsel %vm1604_vm4, %v4462_v13, %v960_v5  ;;  %v1620_v63 = vsel %vm1604_vm4, %v4463_v20, %v928_v34 }
 0x26c   : > { %v1086_v56 = vpop.permute.xlu1 %1085  ;;  %v1054_v50 = vpop.permute.xlu0 %1053 }
 0x26d   : > { %v1668_v16 = vsel %vm1637_vm5, %v1635_v39, %v1086_v56  ;;  %v1652_v52 = vsel %vm1637_vm5, %v1619_v48, %v1054_v50 }
 0x270   : > { %v1468_v40 = vpop.permute.xlu1 %1467  ;;  %v1436_v12 = vpop.permute.xlu0 %1435 }
 0x271   : > { %v1766_v23 = vsel %vm1736_vm8, %v1733_v22, %v1468_v40  ;;  %v1750_v33 = vsel %vm1736_vm8, %v1717_v58, %v1436_v12 }
 0x272   : > { %2544 = vmatmul.mubr.msk.f32.gmra.mrb[12].mxu0 %vm1781_vm9, %v1750_v33  ;;  %2568 = vmatmul.mubr.msk.f32.gmra.mrb[12].mxu1 %vm1781_vm9, %v1766_v23 }
 0x274   : > { %v1088_v25 = vpop.permute.xlu1 %1087  ;;  %v1056_v37 = vpop.permute.xlu0 %1055 }
 0x275   : > { %v1669_v28 = vsel %vm1637_vm5, %v1636_v4, %v1088_v25  ;;  %v1653_v59 = vsel %vm1637_vm5, %v1620_v63, %v1056_v37 }
 0x278   : > { %v1214_v41 = vpop.permute.xlu1 %1213  ;;  %v1182_v45 = vpop.permute.xlu0 %1181 }
 0x279   : > { %v1701_v17 = vsel %vm1670_vm6, %v1668_v16, %v1214_v41  ;;  %v1685_v15 = vsel %vm1670_vm6, %v1652_v52, %v1182_v45 }
 0x27c   : > { %v1216_v62 = vpop.permute.xlu1 %1215  ;;  %v1184_v55 = vpop.permute.xlu0 %1183 }
 0x27d   : > { %v1702_v42 = vsel %vm1670_vm6, %v1669_v28, %v1216_v62  ;;  %v1686_v60 = vsel %vm1670_vm6, %v1653_v59, %v1184_v55 }
 0x27e   : > { %v2530_v1 = vpop.f32.mrb[2].mxu0  ;;  %v2554_v44 = vpop.f32.mrb[2].mxu1 }
 0x27f   : > { %v1964_v27 = vadd.f32 %v2530_v1, %v4132_v18  ;;  %v2044_v24 = vadd.f32 %v2554_v44, %v4132_v18  ;;  %v1958_v46 = vpop.f32.mrb[3].mxu0  ;;  %v2038_v31 = vpop.f32.mrb[3].mxu1 }
 0x280   : > { %v1959_v54 = vadd.f32 %v4132_v18, %v1958_v46  ;;  %v2039_v10 = vadd.f32 %v4132_v18, %v2038_v31  ;;  %v1342_v7 = vpop.permute.xlu1 %1341  ;;  %v1310_v53 = vpop.permute.xlu0 %1309 }
 0x281   : > { %2110 = vst [vmem:[%s4142_s10 + $0x18] sm:$0xff] %v1964_v27  ;;  %2126 = vst [vmem:[%s4142_s10 + $0x98] sm:$0xff] %v2044_v24  ;;  %v1734_v29 = vsel %vm1703_vm7, %v1701_v17, %v1342_v7  ;;  %v1718_v57 = vsel %vm1703_vm7, %v1685_v15, %v1310_v53 }
 0x282   : > { %2109 = vst [vmem:[%s4142_s10 + $0x10] sm:$0xff] %v1959_v54  ;;  %2125 = vst [vmem:[%s4142_s10 + $0x90] sm:$0xff] %v2039_v10 }
 0x284   : > { %v1344_v8 = vpop.permute.xlu1 %1343  ;;  %v1312_v38 = vpop.permute.xlu0 %1311 }
 0x285   : > { %v1735_v26 = vsel %vm1703_vm7, %v1702_v42, %v1344_v8  ;;  %v1719_v3 = vsel %vm1703_vm7, %v1686_v60, %v1312_v38 }
 0x288   : > { %v1470_v14 = vpop.permute.xlu1 %1469  ;;  %v1438_v11 = vpop.permute.xlu0 %1437 }
 0x289   : > { %v1767_v32 = vsel %vm1736_vm8, %v1734_v29, %v1470_v14  ;;  %v1751_v35 = vsel %vm1736_vm8, %v1718_v57, %v1438_v11 }
 0x28a   : > { %2546 = vmatprep.mubr.msk.f32.mxu0 %vm1781_vm9, %v1751_v35  ;;  %2570 = vmatprep.mubr.msk.f32.mxu1 %vm1781_vm9, %v1767_v32 }
 0x28c   : > { %v1472_v0 = vpop.permute.xlu1 %1471  ;;  %v1440_v21 = vpop.permute.xlu0 %1439 }
 0x28d   : > { %v1768_v36 = vsel %vm1736_vm8, %v1735_v26, %v1472_v0  ;;  %v1752_v5 = vsel %vm1736_vm8, %v1719_v3, %v1440_v21 }
 0x28e   : > { %2547 = vmatmul.mubr.msk.f32.gmra.mrb[14].mxu0 %vm1781_vm9, %v1752_v5  ;;  %2571 = vmatmul.mubr.msk.f32.gmra.mrb[14].mxu1 %vm1781_vm9, %v1768_v36 }
 0x2a6   : > { %v2533_v34 = vpop.f32.mrb[4].mxu0  ;;  %v2557_v56 = vpop.f32.mrb[4].mxu1 }
 0x2a7   : > { %v1974_v50 = vadd.f32 %v2533_v34, %v4132_v18  ;;  %v2054_v9 = vadd.f32 %v2557_v56, %v4132_v18  ;;  %v1968_v30 = vpop.f32.mrb[5].mxu0  ;;  %v2048_v49 = vpop.f32.mrb[5].mxu1 }
 0x2a8   : > { %v1969_v2 = vadd.f32 %v4132_v18, %v1968_v30  ;;  %v2049_v43 = vadd.f32 %v4132_v18, %v2048_v49 }
 0x2a9   : > { %2112 = vst [vmem:[%s4142_s10 + $0x28] sm:$0xff] %v1974_v50  ;;  %2128 = vst [vmem:[%s4142_s10 + $0xa8] sm:$0xff] %v2054_v9 }
 0x2aa   : > { %2111 = vst [vmem:[%s4142_s10 + $0x20] sm:$0xff] %v1969_v2  ;;  %2127 = vst [vmem:[%s4142_s10 + $0xa0] sm:$0xff] %v2049_v43 }
 0x2ce   : > { %v2536_v51 = vpop.f32.mrb[6].mxu0  ;;  %v2560_v47 = vpop.f32.mrb[6].mxu1 }
 0x2cf   : > { %v1984_v61 = vadd.f32 %v2536_v51, %v4132_v18  ;;  %v2064_v22 = vadd.f32 %v2560_v47, %v4132_v18  ;;  %v1978_v58 = vpop.f32.mrb[7].mxu0  ;;  %v2058_v40 = vpop.f32.mrb[7].mxu1 }
 0x2d0   : > { %v1979_v12 = vadd.f32 %v4132_v18, %v1978_v58  ;;  %v2059_v23 = vadd.f32 %v4132_v18, %v2058_v40 }
 0x2d1   : > { %2114 = vst [vmem:[%s4142_s10 + $0x38] sm:$0xff] %v1984_v61  ;;  %2130 = vst [vmem:[%s4142_s10 + $0xb8] sm:$0xff] %v2064_v22 }
 0x2d2   : > { %2113 = vst [vmem:[%s4142_s10 + $0x30] sm:$0xff] %v1979_v12  ;;  %2129 = vst [vmem:[%s4142_s10 + $0xb0] sm:$0xff] %v2059_v23 }
 0x2f5   : > { %v2539_v33 = vpop.f32.mrb[8].mxu0  ;;  %v2563_v25 = vpop.f32.mrb[8].mxu1 }
 0x2f6   : > { %v1994_v37 = vadd.f32 %v2539_v33, %v4132_v18  ;;  %v2074_v41 = vadd.f32 %v2563_v25, %v4132_v18  ;;  %v1988_v45 = vpop.f32.mrb[9].mxu0  ;;  %v2068_v62 = vpop.f32.mrb[9].mxu1 }
 0x2f7   : > { %v1989_v55 = vadd.f32 %v4132_v18, %v1988_v45  ;;  %v2069_v1 = vadd.f32 %v4132_v18, %v2068_v62 }
 0x2f8   : > { %2116 = vst [vmem:[%s4142_s10 + $0x48] sm:$0xff] %v1994_v37  ;;  %2132 = vst [vmem:[%s4142_s10 + $0xc8] sm:$0xff] %v2074_v41 }
 0x2f9   : > { %2115 = vst [vmem:[%s4142_s10 + $0x40] sm:$0xff] %v1989_v55  ;;  %2131 = vst [vmem:[%s4142_s10 + $0xc0] sm:$0xff] %v2069_v1 }
 0x31d   : > { %v2542_v44 = vpop.f32.mrb[10].mxu0  ;;  %v2566_v27 = vpop.f32.mrb[10].mxu1 }
 0x31e   : > { %v2004_v24 = vadd.f32 %v2542_v44, %v4132_v18  ;;  %v2084_v46 = vadd.f32 %v2566_v27, %v4132_v18  ;;  %v1998_v31 = vpop.f32.mrb[11].mxu0  ;;  %v2078_v54 = vpop.f32.mrb[11].mxu1 }
 0x31f   : > { %v1999_v10 = vadd.f32 %v4132_v18, %v1998_v31  ;;  %v2079_v7 = vadd.f32 %v4132_v18, %v2078_v54 }
 0x320   : > { %2118 = vst [vmem:[%s4142_s10 + $0x58] sm:$0xff] %v2004_v24  ;;  %2134 = vst [vmem:[%s4142_s10 + $0xd8] sm:$0xff] %v2084_v46 }
 0x321   : > { %2117 = vst [vmem:[%s4142_s10 + $0x50] sm:$0xff] %v1999_v10  ;;  %2133 = vst [vmem:[%s4142_s10 + $0xd0] sm:$0xff] %v2079_v7 }
 0x345   : > { %v2545_v53 = vpop.f32.mrb[12].mxu0  ;;  %v2569_v8 = vpop.f32.mrb[12].mxu1 }
 0x346   : > { %v2014_v38 = vadd.f32 %v2545_v53, %v4132_v18  ;;  %v2094_v6 = vadd.f32 %v2569_v8, %v4132_v18  ;;  %v2008_v39 = vpop.f32.mrb[13].mxu0  ;;  %v2088_v19 = vpop.f32.mrb[13].mxu1 }
 0x347   : > { %v2009_v48 = vadd.f32 %v4132_v18, %v2008_v39  ;;  %v2089_v16 = vadd.f32 %v4132_v18, %v2088_v19 }
 0x348   : > { %2120 = vst [vmem:[%s4142_s10 + $0x68] sm:$0xff] %v2014_v38  ;;  %2136 = vst [vmem:[%s4142_s10 + $0xe8] sm:$0xff] %v2094_v6 }
 0x349   : > { %2119 = vst [vmem:[%s4142_s10 + $0x60] sm:$0xff] %v2009_v48  ;;  %2135 = vst [vmem:[%s4142_s10 + $0xe0] sm:$0xff] %v2089_v16 }
 0x361   : > { %v2548_v52 = vpop.f32.mrb[14].mxu0  ;;  %v2572_v17 = vpop.f32.mrb[14].mxu1 }
 0x362   : > { %v2024_v15 = vadd.f32 %v2548_v52, %v4132_v18  ;;  %v2104_v29 = vadd.f32 %v2572_v17, %v4132_v18  ;;  %v2018_v57 = vpop.f32.mrb[15].mxu0  ;;  %v2098_v14 = vpop.f32.mrb[15].mxu1 }
 0x363   : > { %v2019_v11 = vadd.f32 %v4132_v18, %v2018_v57  ;;  %v2099_v13 = vadd.f32 %v4132_v18, %v2098_v14 }
 0x364   : > { %2122 = vst [vmem:[%s4142_s10 + $0x78] sm:$0xff] %v2024_v15  ;;  %2138 = vst [vmem:[%s4142_s10 + $0xf8] sm:$0xff] %v2104_v29 }
 0x365   : > { %2121 = vst [vmem:[%s4142_s10 + $0x70] sm:$0xff] %v2019_v11  ;;  %2137 = vst [vmem:[%s4142_s10 + $0xf0] sm:$0xff] %v2099_v13 }
 0x366   : > { %2665 = shalt.err (!%p2662_p5)
}
 0x367   : > { %s2666_s4 = scalar_lea.hbm %s4265_s23, 4096  ;;  %s2670_s7 = scalar_lea.hbm %s4327_s3, 8192 }
 0x368   : > { %p2667_p6 = scmp.ne.s32.totalorder %s4265_s23, %s2666_s4  ;;  %p2671_p10 = scmp.lt.u32.totalorder %s4265_s23, %s4327_s3 }
 0x369   : > { %p2672_p11 = scmp.lt.u32.totalorder %s2670_s7, %s2666_s4  ;;  %p2674_p13 = scmp.lt.u32.totalorder %s2666_s4, %s4265_s23 }
 0x36a   : > { %p2668_p7 = pnand %p2667_p6, %p2802_p4 }
 0x36b   : > { %p2673_p12 = por %p2672_p11, %p2671_p10 }
 0x36c   : > { %p2669_p9 = pneg %p2668_p7 }
 0x36d   : > { %p2675_p0 = por %p2674_p13, %p2673_p12 }
 0x36f   : > { %p2676_p1 = pnand %p2675_p0, %p2669_p9 }
 0x371   : > { %2679 = shalt.err (!%p2676_p1)
}
 0x372   : > { %s2741_s10 = smov 128  }
 0x373   : > { %2588 = dma.vmem_to_hbm [thread:$0]  (%p2802_p4), %s4269_s18, 4096, %s4265_s23, %s4277_s15, %s2741_s10, %s2741_s10, %s2733_s5  }
 0x374 PF: > { %p2594_p2 = scmp.ge.s32.totalorder %s2730_s17, 2  ;;  %s2171_s11 = sand.u32 1, %s2710_s12  }
 0x375   : > { %s2172_s19 = scalar_lea.sflag [#allocation3], %s2171_s11 }
 0x376   : > { %p2591_p3 = pnand %p2594_p2, %p2809_p8 }
 0x378   : > { %2705 = dma.done.wait (!%p2591_p3), %s2172_s19, 4096  }
 0x379   : > { %2707 = vsyncadd (!%p2591_p3), %s2172_s19, 4294963200  ;;  %s16_s17 = sadd.s32 1, %s2730_s17   ;;  %s4464_s12 = smov %s2714_s13 }
 0x37a   : > { %p13_p5 = scmp.ge.s32.totalorder %s16_s17, 4   ;;  %s4465_s13 = smov %s2718_s14 }
 0x37b   : > { %s4466_s14 = smov %s2815_s25  ;;  %s4467_s15 = smov %s2726_s16 }
 0x37c   : > { %s4468_s16 = smov %s4470_s20  ;;  %15 = sbr.rel (!%p13_p5) target bundleno = 4 (0x4), region = 70 }
 0x383   :  { %2177 = vsyncpa [#allocation3], 1 }
 0x384   :  { %2179 = vsyncpa [#allocation3 + $0x1], 1 }

</bundles_post_ra>
